<compile_context>
chip_gen: v7x
topology: tpu7x:2x2x1
jax: 0.10.0
libtpu: 0.0.40
codegen_flags: <defaults>
</compile_context>

<pallas_src>
import functools

import jax
import jax.numpy as jnp
from jax import lax
from jax.experimental import pallas as pl
from jax.experimental.pallas import tpu as pltpu

_LANE = 128
_SUBLANE = 8


def _round_up(x, m):
    return (x + m - 1) // m * m


def _lstm_stack_kernel(n_layers, tc, b_pad, H, g4, x_ref, *refs):
    """All LSTM layers for one time chunk of tc steps.

    refs = [w_hh_0, ..., w_hh_{L-1},
            w_ih_1, b_1, ..., w_ih_{L-1}, b_{L-1},
            hseq_ref, h_state, c_state, gin_buf]

    Shapes (all f32, packed gate order i|f|g|o in one lane group):
      x_ref    : (tc*B_pad, g4)   layer-0 gate pre-activations (embed@W_ih0+b0,
                                  gathered by token in the wrapper)
      w_hh_l   : (H, g4)
      w_ih_l   : (H, g4)          only for layers 1..L-1 (fused projection)
      b_l      : (1, g4)          only for layers 1..L-1
      hseq_ref : (tc*B_pad, H)    last layer's h sequence (output block)
      h_state  : (L, B_pad, H)    carried across chunks (scratch)
      c_state  : (L, B_pad, H)    carried across chunks (scratch)
      gin_buf  : (2, tc*B_pad, g4) ping-pong buffer holding layer l+1's
                                  pre-activations, produced inside layer l's loop
    """
    w_hh_refs = refs[:n_layers]
    proj_refs = refs[n_layers:3 * n_layers - 2]
    hseq_ref = refs[3 * n_layers - 2]
    h_state = refs[3 * n_layers - 1]
    c_state = refs[3 * n_layers]
    gin_buf = refs[3 * n_layers + 1]

    @pl.when(pl.program_id(0) == 0)
    def _():
        h_state[...] = jnp.zeros_like(h_state)
        c_state[...] = jnp.zeros_like(c_state)

    # Hoisted lane masks: gate layout [i|f|g|o] inside one lane group.
    lane = lax.broadcasted_iota(jnp.int32, (b_pad, g4), 1)
    is_g_lane = (lane >= 2 * H) & (lane < 3 * H)
    # sigmoid(z) = 0.5*(tanh(0.5 z)+1): one tanh over the whole vreg (EUP slot),
    # scale 0.5 on sigmoid lanes, 1.0 on the cell-candidate lanes.
    scale = jnp.where(is_g_lane, jnp.float32(1.0), jnp.float32(0.5))

    for l in range(n_layers):
        u_ref = w_hh_refs[l]
        is_last = (l == n_layers - 1)
        w_next = None if is_last else proj_refs[2 * l]       # w_ih_{l+1}
        b_next = None if is_last else proj_refs[2 * l + 1]   # b_{l+1}

        def step(t, carry, l=l, u_ref=u_ref, is_last=is_last,
                 w_next=w_next, b_next=b_next):
            h, c = carry                       # (b_pad, H) each
            row = pl.multiple_of(t * b_pad, b_pad)

            if l == 0:
                g_in = x_ref[pl.ds(row, b_pad), :]
            else:
                g_in = gin_buf[(l - 1) % 2, pl.ds(row, b_pad), :]

            # Recurrent projection on the serial critical path: K=H, N=4H.
            g = g_in + jnp.dot(h, u_ref[...],
                               preferred_element_type=jnp.float32)   # (b_pad, g4)

            # One transcendental over the whole gate vreg + lane selects.
            t_all = jnp.tanh(g * scale)
            a = jnp.where(is_g_lane, t_all, 0.5 * (t_all + 1.0))

            i_g = a[:, 0 * H:1 * H]
            f_g = a[:, 1 * H:2 * H]
            g_g = a[:, 2 * H:3 * H]
            o_g = a[:, 3 * H:4 * H]

            c_new = f_g * c + i_g * g_g
            h_new = o_g * jnp.tanh(c_new)

            if is_last:
                hseq_ref[pl.ds(row, b_pad), :] = h_new
            else:
                # Fused next-layer input projection: off the h(t)->h(t+1)
                # dependency chain, fills idle MXU issue slots.
                gin_buf[l % 2, pl.ds(row, b_pad), :] = (
                    jnp.dot(h_new, w_next[...],
                            preferred_element_type=jnp.float32)
                    + b_next[...]
                )
            return (h_new, c_new)

        h, c = lax.fori_loop(0, tc, step, (h_state[l], c_state[l]),
                             unroll=min(tc, 8))
        h_state[l] = h
        c_state[l] = c


def _default_time_chunk(T):
    for cand in range(min(T, 32), 0, -1):
        if T % cand == 0:
            return cand
    return T


def next_char_lstm_forward(tokens, params, *, time_chunk=None):
    """Pallas-backed forward pass. tokens: (B, T) int32 -> (B, O, T) float32."""
    embed = params["embed"]                    # (V, E)
    lstm_layers = params["lstm"]               # list of {w_ih, w_hh, b}
    w_dec, b_dec = params["w_dec"], params["b_dec"]

    B, T = tokens.shape
    H = lstm_layers[0]["w_hh"].shape[0]
    L = len(lstm_layers)
    O = w_dec.shape[1]

    g4 = _round_up(4 * H, _LANE)               # packed gate group width
    b_pad = _round_up(B, _SUBLANE)             # fill the sublanes

    tc = _default_time_chunk(T) if time_chunk is None else time_chunk
    assert T % tc == 0, (T, tc)
    n_chunks = T // tc

    # --- Embedding + layer-0 projection folded into one lookup table (V is tiny).
    l0 = lstm_layers[0]
    lut = (jnp.dot(embed.astype(jnp.float32), l0["w_ih"].astype(jnp.float32),
                   precision=lax.Precision.HIGHEST)
           + l0["b"].astype(jnp.float32))                      # (V, 4H)
    if g4 != 4 * H:
        lut = jnp.pad(lut, ((0, 0), (0, g4 - 4 * H)))
    x = jnp.take(lut, tokens, axis=0)                          # (B, T, g4)
    x = jnp.transpose(x, (1, 0, 2))                            # (T, B, g4)
    if b_pad != B:
        # Padded batch rows are independent of real rows; their values are discarded.
        x = jnp.pad(x, ((0, 0), (0, b_pad - B), (0, 0)))
    x = x.reshape(T * b_pad, g4).astype(jnp.float32)

    inputs = [x]
    in_specs = [pl.BlockSpec((tc * b_pad, g4), lambda i: (i, 0))]

    # Recurrent weights (every layer): (H, g4), gates packed, no row padding.
    for layer in lstm_layers:
        w_hh = layer["w_hh"].astype(jnp.float32)
        if g4 != 4 * H:
            w_hh = jnp.pad(w_hh, ((0, 0), (0, g4 - 4 * H)))
        inputs.append(w_hh)
        in_specs.append(pl.BlockSpec((H, g4), lambda i: (0, 0)))

    # Inter-layer projection weights for layers 1..L-1 (fused into the loop).
    for layer in lstm_layers[1:]:
        w_ih = layer["w_ih"].astype(jnp.float32)               # (H, 4H)
        b = layer["b"].astype(jnp.float32)                     # (1, 4H)
        if g4 != 4 * H:
            w_ih = jnp.pad(w_ih, ((0, 0), (0, g4 - 4 * H)))
            b = jnp.pad(b, ((0, 0), (0, g4 - 4 * H)))
        inputs.append(w_ih)
        in_specs.append(pl.BlockSpec((H, g4), lambda i: (0, 0)))
        inputs.append(b)
        in_specs.append(pl.BlockSpec((1, g4), lambda i: (0, 0)))

    kernel = functools.partial(_lstm_stack_kernel, L, tc, b_pad, H, g4)

    hseq = pl.pallas_call(
        kernel,
        out_shape=jax.ShapeDtypeStruct((T * b_pad, H), jnp.float32),
        grid_spec=pltpu.PrefetchScalarGridSpec(
            num_scalar_prefetch=0,
            grid=(n_chunks,),
            in_specs=in_specs,
            out_specs=pl.BlockSpec((tc * b_pad, H), lambda i: (i, 0)),
            scratch_shapes=[
                pltpu.VMEM((L, b_pad, H), jnp.float32),         # h state
                pltpu.VMEM((L, b_pad, H), jnp.float32),         # c state
                pltpu.VMEM((2, tc * b_pad, g4), jnp.float32),   # ping-pong gin
            ],
        ),
        compiler_params=pltpu.CompilerParams(
            dimension_semantics=("arbitrary",),   # time chunks are sequential
        ),
    )(*inputs)                                     # (T*b_pad, H)

    # Decoder projection + permute as one fused XLA matmul (no lane sub-slice:
    # hseq is exactly H wide).
    logits = jnp.dot(hseq, w_dec.astype(jnp.float32),
                     precision=lax.Precision.HIGHEST) + b_dec.astype(jnp.float32)
    logits = logits.reshape(T, b_pad, O)[:, :B, :]   # (T, B, O)
    return jnp.transpose(logits, (1, 2, 0))          # (B, O, T) == permute(0,2,1)


def reference_forward(tokens, params):
    """Pure-JAX reference matching torch.nn.{Embedding,LSTM,Linear}."""
    x = jnp.take(params["embed"], tokens, axis=0)     # (B, T, E)
    B = x.shape[0]
    for layer in params["lstm"]:
        w_ih, w_hh, b = layer["w_ih"], layer["w_hh"], layer["b"]
        H = w_hh.shape[0]

        def step(carry, xt, w_ih=w_ih, w_hh=w_hh, b=b, H=H):
            h, c = carry
            gates = (jnp.dot(xt, w_ih, precision=lax.Precision.HIGHEST)
                     + jnp.dot(h, w_hh, precision=lax.Precision.HIGHEST) + b)
            i = jax.nn.sigmoid(gates[:, 0 * H:1 * H])
            f = jax.nn.sigmoid(gates[:, 1 * H:2 * H])
            g = jnp.tanh(gates[:, 2 * H:3 * H])
            o = jax.nn.sigmoid(gates[:, 3 * H:4 * H])
            c = f * c + i * g
            h = o * jnp.tanh(c)
            return (h, c), h

        h0 = jnp.zeros((B, H), jnp.float32)
        c0 = jnp.zeros((B, H), jnp.float32)
        _, ys = lax.scan(step, (h0, c0), jnp.transpose(x, (1, 0, 2)))
        x = jnp.transpose(ys, (1, 0, 2))
    logits = (jnp.dot(x, params["w_dec"], precision=lax.Precision.HIGHEST)
              + params["b_dec"])                      # (B, T, O)
    return jnp.transpose(logits, (0, 2, 1))           # (B, O, T)


def init_params(key, input_size, embed_size, hidden_size, output_size, n_layers):
    # NOTE: `b` plays the role of torch's b_ih + b_hh (sum them when porting
    # real nn.LSTM weights).
    n_keys = 3 + 3 * n_layers
    keys = jax.random.split(key, n_keys)
    k = iter(list(keys))
    scale = 0.1
    params = {
        "embed": scale * jax.random.normal(next(k), (input_size, embed_size), jnp.float32),
        "lstm": [],
    }
    in_dim = embed_size
    for _ in range(n_layers):
        w_ih = scale * jax.random.normal(next(k), (in_dim, 4 * hidden_size), jnp.float32)
        w_hh = scale * jax.random.normal(next(k), (hidden_size, 4 * hidden_size), jnp.float32)
        b = scale * jax.random.normal(next(k), (1, 4 * hidden_size), jnp.float32)
        params["lstm"].append({"w_ih": w_ih, "w_hh": w_hh, "b": b})
        in_dim = hidden_size
    params["w_dec"] = scale * jax.random.normal(next(k), (hidden_size, output_size), jnp.float32)
    params["b_dec"] = scale * jax.random.normal(next(k), (1, output_size), jnp.float32)
    return params


if __name__ == "__main__":
    # Module hyperparameters (small, consistent with NextCharacterLSTM.__init__)
    input_size = 16      # vocab size
    embed_size = 32
    hidden_size = 32
    output_size = 16
    n_layers = 2

    batch = 2
    seq = 8

    key = jax.random.PRNGKey(0)
    pkey, tkey = jax.random.split(key)
    params = init_params(pkey, input_size, embed_size, hidden_size, output_size, n_layers)
    tokens = jax.random.randint(tkey, (batch, seq), 0, input_size, dtype=jnp.int32)

    out = jax.block_until_ready(jax.jit(next_char_lstm_forward)(tokens, params))
    ref = jax.block_until_ready(reference_forward(tokens, params))

    assert out.shape == (batch, output_size, seq), out.shape
    max_err = float(jnp.max(jnp.abs(out - ref)))
    # f32 everywhere; small slack for MXU vs XLA accumulation-order differences.
    assert jnp.allclose(out, ref, atol=2e-3, rtol=2e-3), max_err

    print("KERNEL_OK")
</pallas_src>

<mosaic_0001>
module attributes {stable_mosaic.version = 11 : i64} {
  func.func @_lstm_stack_kernel(%arg0: i32, %arg1: memref<64x128xf32, #tpu.memory_space<vmem>>, %arg2: memref<32x128xf32, #tpu.memory_space<vmem>>, %arg3: memref<32x128xf32, #tpu.memory_space<vmem>>, %arg4: memref<32x128xf32, #tpu.memory_space<vmem>>, %arg5: memref<1x128xf32, #tpu.memory_space<vmem>>, %arg6: memref<64x32xf32, #tpu.memory_space<vmem>>, %arg7: memref<2x8x32xf32, #tpu.memory_space<vmem>>, %arg8: memref<2x8x32xf32, #tpu.memory_space<vmem>>, %arg9: memref<2x64x128xf32, #tpu.memory_space<vmem>>) attributes {dimension_semantics = [#tpu.dimension_semantics<arbitrary>], iteration_bounds = array<i64: 1>, scalar_prefetch = 0 : i64, scratch_operands = 3 : i64, tpu.core_type = #tpu.core_type<tc>, window_params = [{transform_indices = @transform_0, window_bounds = array<i64: 64, 128>}, {pipeline_mode = #tpu.pipeline_mode<synchronous>, transform_indices = @transform_1, window_bounds = array<i64: 32, 128>}, {pipeline_mode = #tpu.pipeline_mode<synchronous>, transform_indices = @transform_2, window_bounds = array<i64: 32, 128>}, {pipeline_mode = #tpu.pipeline_mode<synchronous>, transform_indices = @transform_3, window_bounds = array<i64: 32, 128>}, {pipeline_mode = #tpu.pipeline_mode<synchronous>, transform_indices = @transform_4, window_bounds = array<i64: 1, 128>}, {transform_indices = @transform_5, window_bounds = array<i64: 64, 32>}]} {
    %c0_i32 = arith.constant 0 : i32
    %0 = arith.cmpi eq, %arg0, %c0_i32 : i32
    %1 = arith.extui %0 : i1 to i32
    %c0_i32_0 = arith.constant 0 : i32
    %2 = arith.cmpi ne, %1, %c0_i32_0 : i32
    scf.if %2 {
      %cst_218 = arith.constant 0.000000e+00 : f32
      %496 = vector.broadcast %cst_218 : f32 to vector<2x8x32xf32>
      %c0_219 = arith.constant 0 : index
      %c0_220 = arith.constant 0 : index
      %c0_221 = arith.constant 0 : index
      %497 = vector.load %arg7[%c0_219, %c0_220, %c0_221] : memref<2x8x32xf32, #tpu.memory_space<vmem>>, vector<2x8x32xf32>
      tpu.vector_store %arg7[%c0_219, %c0_220, %c0_221], %496 {strides = array<i32>} : memref<2x8x32xf32, #tpu.memory_space<vmem>>, vector<2x8x32xf32>,
      %cst_222 = arith.constant 0.000000e+00 : f32
      %498 = vector.broadcast %cst_222 : f32 to vector<2x8x32xf32>
      %c0_223 = arith.constant 0 : index
      %c0_224 = arith.constant 0 : index
      %c0_225 = arith.constant 0 : index
      %499 = vector.load %arg8[%c0_223, %c0_224, %c0_225] : memref<2x8x32xf32, #tpu.memory_space<vmem>>, vector<2x8x32xf32>
      tpu.vector_store %arg8[%c0_223, %c0_224, %c0_225], %498 {strides = array<i32>} : memref<2x8x32xf32, #tpu.memory_space<vmem>>, vector<2x8x32xf32>,
    } else {
    }
    %3 = tpu.iota {dimensions = array<i32: 1>} : vector<8x128xi32>
    %c64_i32 = arith.constant 64 : i32
    %4 = vector.broadcast %c64_i32 : i32 to vector<8x128xi32>
    %5 = arith.cmpi sge, %3, %4 : vector<8x128xi32>
    %c96_i32 = arith.constant 96 : i32
    %6 = vector.broadcast %c96_i32 : i32 to vector<8x128xi32>
    %7 = arith.cmpi slt, %3, %6 : vector<8x128xi32>
    %8 = arith.andi %5, %7 : vector<8x128xi1>
    %cst = arith.constant 1.000000e+00 : f32
    %cst_1 = arith.constant 5.000000e-01 : f32
    %9 = vector.broadcast %cst : f32 to vector<8x128xf32>
    %10 = vector.broadcast %cst_1 : f32 to vector<8x128xf32>
    %11 = arith.select %8, %9, %10 : vector<8x128xi1>, vector<8x128xf32>
    %c0 = arith.constant 0 : index
    %c0_2 = arith.constant 0 : index
    %c0_3 = arith.constant 0 : index
    %12 = vector.load %arg7[%c0, %c0_2, %c0_3] : memref<2x8x32xf32, #tpu.memory_space<vmem>>, vector<1x8x32xf32>
    %13 = vector.shape_cast %12 : vector<1x8x32xf32> to vector<8x32xf32>
    %c0_4 = arith.constant 0 : index
    %c0_5 = arith.constant 0 : index
    %c0_6 = arith.constant 0 : index
    %14 = vector.load %arg8[%c0_4, %c0_5, %c0_6] : memref<2x8x32xf32, #tpu.memory_space<vmem>>, vector<1x8x32xf32>
    %15 = vector.shape_cast %14 : vector<1x8x32xf32> to vector<8x32xf32>
    %c0_i32_7 = arith.constant 0 : i32
    %c8_i32 = arith.constant 8 : i32
    %16 = arith.muli %c0_i32_7, %c8_i32 : i32
    %17 = tpu.assume_multiple %16, 8 : i32
    %18 = arith.index_cast %17 : i32 to index
    %c0_8 = arith.constant 0 : index
    %19 = vector.load %arg1[%18, %c0_8] : memref<64x128xf32, #tpu.memory_space<vmem>>, vector<8x128xf32>
    %c0_9 = arith.constant 0 : index
    %c0_10 = arith.constant 0 : index
    %20 = vector.load %arg2[%c0_9, %c0_10] : memref<32x128xf32, #tpu.memory_space<vmem>>, vector<32x128xf32>
    %cst_11 = arith.constant dense<0.000000e+00> : vector<8x128xf32>
    %21 = tpu.matmul %13, %20, %cst_11 {dimension_numbers = #tpu.dot_dimension_numbers<[1], [0], [0], [1], [0, 0, 1, 1], [], []>} : vector<8x32xf32>, vector<32x128xf32>, vector<8x128xf32> -> vector<8x128xf32>
    %22 = arith.addf %19, %21 : vector<8x128xf32>
    %23 = arith.mulf %22, %11 : vector<8x128xf32>
    %24 = math.tanh %23 : vector<8x128xf32>
    %cst_12 = arith.constant 1.000000e+00 : f32
    %25 = vector.broadcast %cst_12 : f32 to vector<8x128xf32>
    %26 = arith.addf %24, %25 : vector<8x128xf32>
    %cst_13 = arith.constant 5.000000e-01 : f32
    %27 = vector.broadcast %cst_13 : f32 to vector<8x128xf32>
    %28 = arith.mulf %27, %26 : vector<8x128xf32>
    %29 = arith.select %8, %24, %28 : vector<8x128xi1>, vector<8x128xf32>
    %30 = vector.extract_strided_slice %29 {offsets = [0, 0], sizes = [8, 32], strides = [1, 1]} : vector<8x128xf32> to vector<8x32xf32>
    %31 = vector.extract_strided_slice %29 {offsets = [0, 32], sizes = [8, 32], strides = [1, 1]} : vector<8x128xf32> to vector<8x32xf32>
    %32 = vector.extract_strided_slice %29 {offsets = [0, 64], sizes = [8, 32], strides = [1, 1]} : vector<8x128xf32> to vector<8x32xf32>
    %33 = vector.extract_strided_slice %29 {offsets = [0, 96], sizes = [8, 32], strides = [1, 1]} : vector<8x128xf32> to vector<8x32xf32>
    %34 = arith.mulf %31, %15 : vector<8x32xf32>
    %35 = arith.mulf %30, %32 : vector<8x32xf32>
    %36 = arith.addf %34, %35 : vector<8x32xf32>
    %37 = math.tanh %36 : vector<8x32xf32>
    %38 = arith.mulf %33, %37 : vector<8x32xf32>
    %c0_14 = arith.constant 0 : index
    %c0_15 = arith.constant 0 : index
    %39 = vector.load %arg4[%c0_14, %c0_15] : memref<32x128xf32, #tpu.memory_space<vmem>>, vector<32x128xf32>
    %cst_16 = arith.constant dense<0.000000e+00> : vector<8x128xf32>
    %40 = tpu.matmul %38, %39, %cst_16 {dimension_numbers = #tpu.dot_dimension_numbers<[1], [0], [0], [1], [0, 0, 1, 1], [], []>} : vector<8x32xf32>, vector<32x128xf32>, vector<8x128xf32> -> vector<8x128xf32>
    %c0_17 = arith.constant 0 : index
    %c0_18 = arith.constant 0 : index
    %41 = vector.load %arg5[%c0_17, %c0_18] : memref<1x128xf32, #tpu.memory_space<vmem>>, vector<1x128xf32>
    %42 = vector.broadcast %41 : vector<1x128xf32> to vector<8x128xf32>
    %43 = arith.addf %40, %42 : vector<8x128xf32>
    %c0_19 = arith.constant 0 : index
    %44 = arith.index_cast %17 : i32 to index
    %c0_20 = arith.constant 0 : index
    %45 = vector.load %arg9[%c0_19, %44, %c0_20] : memref<2x64x128xf32, #tpu.memory_space<vmem>>, vector<1x8x128xf32>
    %46 = vector.shape_cast %45 : vector<1x8x128xf32> to vector<8x128xf32>
    %47 = vector.shape_cast %43 : vector<8x128xf32> to vector<1x8x128xf32>
    tpu.vector_store %arg9[%c0_19, %44, %c0_20], %47 {strides = array<i32>} : memref<2x64x128xf32, #tpu.memory_space<vmem>>, vector<1x8x128xf32>,
    %c1_i32 = arith.constant 1 : i32
    %c8_i32_21 = arith.constant 8 : i32
    %48 = arith.muli %c1_i32, %c8_i32_21 : i32
    %49 = tpu.assume_multiple %48, 8 : i32
    %50 = arith.index_cast %49 : i32 to index
    %c0_22 = arith.constant 0 : index
    %51 = vector.load %arg1[%50, %c0_22] : memref<64x128xf32, #tpu.memory_space<vmem>>, vector<8x128xf32>
    %c0_23 = arith.constant 0 : index
    %c0_24 = arith.constant 0 : index
    %52 = vector.load %arg2[%c0_23, %c0_24] : memref<32x128xf32, #tpu.memory_space<vmem>>, vector<32x128xf32>
    %cst_25 = arith.constant dense<0.000000e+00> : vector<8x128xf32>
    %53 = tpu.matmul %38, %52, %cst_25 {dimension_numbers = #tpu.dot_dimension_numbers<[1], [0], [0], [1], [0, 0, 1, 1], [], []>} : vector<8x32xf32>, vector<32x128xf32>, vector<8x128xf32> -> vector<8x128xf32>
    %54 = arith.addf %51, %53 : vector<8x128xf32>
    %55 = arith.mulf %54, %11 : vector<8x128xf32>
    %56 = math.tanh %55 : vector<8x128xf32>
    %cst_26 = arith.constant 1.000000e+00 : f32
    %57 = vector.broadcast %cst_26 : f32 to vector<8x128xf32>
    %58 = arith.addf %56, %57 : vector<8x128xf32>
    %cst_27 = arith.constant 5.000000e-01 : f32
    %59 = vector.broadcast %cst_27 : f32 to vector<8x128xf32>
    %60 = arith.mulf %59, %58 : vector<8x128xf32>
    %61 = arith.select %8, %56, %60 : vector<8x128xi1>, vector<8x128xf32>
    %62 = vector.extract_strided_slice %61 {offsets = [0, 0], sizes = [8, 32], strides = [1, 1]} : vector<8x128xf32> to vector<8x32xf32>
    %63 = vector.extract_strided_slice %61 {offsets = [0, 32], sizes = [8, 32], strides = [1, 1]} : vector<8x128xf32> to vector<8x32xf32>
    %64 = vector.extract_strided_slice %61 {offsets = [0, 64], sizes = [8, 32], strides = [1, 1]} : vector<8x128xf32> to vector<8x32xf32>
    %65 = vector.extract_strided_slice %61 {offsets = [0, 96], sizes = [8, 32], strides = [1, 1]} : vector<8x128xf32> to vector<8x32xf32>
    %66 = arith.mulf %63, %36 : vector<8x32xf32>
    %67 = arith.mulf %62, %64 : vector<8x32xf32>
    %68 = arith.addf %66, %67 : vector<8x32xf32>
    %69 = math.tanh %68 : vector<8x32xf32>
    %70 = arith.mulf %65, %69 : vector<8x32xf32>
    %c0_28 = arith.constant 0 : index
    %c0_29 = arith.constant 0 : index
    %71 = vector.load %arg4[%c0_28, %c0_29] : memref<32x128xf32, #tpu.memory_space<vmem>>, vector<32x128xf32>
    %cst_30 = arith.constant dense<0.000000e+00> : vector<8x128xf32>
    %72 = tpu.matmul %70, %71, %cst_30 {dimension_numbers = #tpu.dot_dimension_numbers<[1], [0], [0], [1], [0, 0, 1, 1], [], []>} : vector<8x32xf32>, vector<32x128xf32>, vector<8x128xf32> -> vector<8x128xf32>
    %c0_31 = arith.constant 0 : index
    %c0_32 = arith.constant 0 : index
    %73 = vector.load %arg5[%c0_31, %c0_32] : memref<1x128xf32, #tpu.memory_space<vmem>>, vector<1x128xf32>
    %74 = vector.broadcast %73 : vector<1x128xf32> to vector<8x128xf32>
    %75 = arith.addf %72, %74 : vector<8x128xf32>
    %c0_33 = arith.constant 0 : index
    %76 = arith.index_cast %49 : i32 to index
    %c0_34 = arith.constant 0 : index
    %77 = vector.load %arg9[%c0_33, %76, %c0_34] : memref<2x64x128xf32, #tpu.memory_space<vmem>>, vector<1x8x128xf32>
    %78 = vector.shape_cast %77 : vector<1x8x128xf32> to vector<8x128xf32>
    %79 = vector.shape_cast %75 : vector<8x128xf32> to vector<1x8x128xf32>
    tpu.vector_store %arg9[%c0_33, %76, %c0_34], %79 {strides = array<i32>} : memref<2x64x128xf32, #tpu.memory_space<vmem>>, vector<1x8x128xf32>,
    %c2_i32 = arith.constant 2 : i32
    %c8_i32_35 = arith.constant 8 : i32
    %80 = arith.muli %c2_i32, %c8_i32_35 : i32
    %81 = tpu.assume_multiple %80, 8 : i32
    %82 = arith.index_cast %81 : i32 to index
    %c0_36 = arith.constant 0 : index
    %83 = vector.load %arg1[%82, %c0_36] : memref<64x128xf32, #tpu.memory_space<vmem>>, vector<8x128xf32>
    %c0_37 = arith.constant 0 : index
    %c0_38 = arith.constant 0 : index
    %84 = vector.load %arg2[%c0_37, %c0_38] : memref<32x128xf32, #tpu.memory_space<vmem>>, vector<32x128xf32>
    %cst_39 = arith.constant dense<0.000000e+00> : vector<8x128xf32>
    %85 = tpu.matmul %70, %84, %cst_39 {dimension_numbers = #tpu.dot_dimension_numbers<[1], [0], [0], [1], [0, 0, 1, 1], [], []>} : vector<8x32xf32>, vector<32x128xf32>, vector<8x128xf32> -> vector<8x128xf32>
    %86 = arith.addf %83, %85 : vector<8x128xf32>
    %87 = arith.mulf %86, %11 : vector<8x128xf32>
    %88 = math.tanh %87 : vector<8x128xf32>
    %cst_40 = arith.constant 1.000000e+00 : f32
    %89 = vector.broadcast %cst_40 : f32 to vector<8x128xf32>
    %90 = arith.addf %88, %89 : vector<8x128xf32>
    %cst_41 = arith.constant 5.000000e-01 : f32
    %91 = vector.broadcast %cst_41 : f32 to vector<8x128xf32>
    %92 = arith.mulf %91, %90 : vector<8x128xf32>
    %93 = arith.select %8, %88, %92 : vector<8x128xi1>, vector<8x128xf32>
    %94 = vector.extract_strided_slice %93 {offsets = [0, 0], sizes = [8, 32], strides = [1, 1]} : vector<8x128xf32> to vector<8x32xf32>
    %95 = vector.extract_strided_slice %93 {offsets = [0, 32], sizes = [8, 32], strides = [1, 1]} : vector<8x128xf32> to vector<8x32xf32>
    %96 = vector.extract_strided_slice %93 {offsets = [0, 64], sizes = [8, 32], strides = [1, 1]} : vector<8x128xf32> to vector<8x32xf32>
    %97 = vector.extract_strided_slice %93 {offsets = [0, 96], sizes = [8, 32], strides = [1, 1]} : vector<8x128xf32> to vector<8x32xf32>
    %98 = arith.mulf %95, %68 : vector<8x32xf32>
    %99 = arith.mulf %94, %96 : vector<8x32xf32>
    %100 = arith.addf %98, %99 : vector<8x32xf32>
    %101 = math.tanh %100 : vector<8x32xf32>
    %102 = arith.mulf %97, %101 : vector<8x32xf32>
    %c0_42 = arith.constant 0 : index
    %c0_43 = arith.constant 0 : index
    %103 = vector.load %arg4[%c0_42, %c0_43] : memref<32x128xf32, #tpu.memory_space<vmem>>, vector<32x128xf32>
    %cst_44 = arith.constant dense<0.000000e+00> : vector<8x128xf32>
    %104 = tpu.matmul %102, %103, %cst_44 {dimension_numbers = #tpu.dot_dimension_numbers<[1], [0], [0], [1], [0, 0, 1, 1], [], []>} : vector<8x32xf32>, vector<32x128xf32>, vector<8x128xf32> -> vector<8x128xf32>
    %c0_45 = arith.constant 0 : index
    %c0_46 = arith.constant 0 : index
    %105 = vector.load %arg5[%c0_45, %c0_46] : memref<1x128xf32, #tpu.memory_space<vmem>>, vector<1x128xf32>
    %106 = vector.broadcast %105 : vector<1x128xf32> to vector<8x128xf32>
    %107 = arith.addf %104, %106 : vector<8x128xf32>
    %c0_47 = arith.constant 0 : index
    %108 = arith.index_cast %81 : i32 to index
    %c0_48 = arith.constant 0 : index
    %109 = vector.load %arg9[%c0_47, %108, %c0_48] : memref<2x64x128xf32, #tpu.memory_space<vmem>>, vector<1x8x128xf32>
    %110 = vector.shape_cast %109 : vector<1x8x128xf32> to vector<8x128xf32>
    %111 = vector.shape_cast %107 : vector<8x128xf32> to vector<1x8x128xf32>
    tpu.vector_store %arg9[%c0_47, %108, %c0_48], %111 {strides = array<i32>} : memref<2x64x128xf32, #tpu.memory_space<vmem>>, vector<1x8x128xf32>,
    %c3_i32 = arith.constant 3 : i32
    %c8_i32_49 = arith.constant 8 : i32
    %112 = arith.muli %c3_i32, %c8_i32_49 : i32
    %113 = tpu.assume_multiple %112, 8 : i32
    %114 = arith.index_cast %113 : i32 to index
    %c0_50 = arith.constant 0 : index
    %115 = vector.load %arg1[%114, %c0_50] : memref<64x128xf32, #tpu.memory_space<vmem>>, vector<8x128xf32>
    %c0_51 = arith.constant 0 : index
    %c0_52 = arith.constant 0 : index
    %116 = vector.load %arg2[%c0_51, %c0_52] : memref<32x128xf32, #tpu.memory_space<vmem>>, vector<32x128xf32>
    %cst_53 = arith.constant dense<0.000000e+00> : vector<8x128xf32>
    %117 = tpu.matmul %102, %116, %cst_53 {dimension_numbers = #tpu.dot_dimension_numbers<[1], [0], [0], [1], [0, 0, 1, 1], [], []>} : vector<8x32xf32>, vector<32x128xf32>, vector<8x128xf32> -> vector<8x128xf32>
    %118 = arith.addf %115, %117 : vector<8x128xf32>
    %119 = arith.mulf %118, %11 : vector<8x128xf32>
    %120 = math.tanh %119 : vector<8x128xf32>
    %cst_54 = arith.constant 1.000000e+00 : f32
    %121 = vector.broadcast %cst_54 : f32 to vector<8x128xf32>
    %122 = arith.addf %120, %121 : vector<8x128xf32>
    %cst_55 = arith.constant 5.000000e-01 : f32
    %123 = vector.broadcast %cst_55 : f32 to vector<8x128xf32>
    %124 = arith.mulf %123, %122 : vector<8x128xf32>
    %125 = arith.select %8, %120, %124 : vector<8x128xi1>, vector<8x128xf32>
    %126 = vector.extract_strided_slice %125 {offsets = [0, 0], sizes = [8, 32], strides = [1, 1]} : vector<8x128xf32> to vector<8x32xf32>
    %127 = vector.extract_strided_slice %125 {offsets = [0, 32], sizes = [8, 32], strides = [1, 1]} : vector<8x128xf32> to vector<8x32xf32>
    %128 = vector.extract_strided_slice %125 {offsets = [0, 64], sizes = [8, 32], strides = [1, 1]} : vector<8x128xf32> to vector<8x32xf32>
    %129 = vector.extract_strided_slice %125 {offsets = [0, 96], sizes = [8, 32], strides = [1, 1]} : vector<8x128xf32> to vector<8x32xf32>
    %130 = arith.mulf %127, %100 : vector<8x32xf32>
    %131 = arith.mulf %126, %128 : vector<8x32xf32>
    %132 = arith.addf %130, %131 : vector<8x32xf32>
    %133 = math.tanh %132 : vector<8x32xf32>
    %134 = arith.mulf %129, %133 : vector<8x32xf32>
    %c0_56 = arith.constant 0 : index
    %c0_57 = arith.constant 0 : index
    %135 = vector.load %arg4[%c0_56, %c0_57] : memref<32x128xf32, #tpu.memory_space<vmem>>, vector<32x128xf32>
    %cst_58 = arith.constant dense<0.000000e+00> : vector<8x128xf32>
    %136 = tpu.matmul %134, %135, %cst_58 {dimension_numbers = #tpu.dot_dimension_numbers<[1], [0], [0], [1], [0, 0, 1, 1], [], []>} : vector<8x32xf32>, vector<32x128xf32>, vector<8x128xf32> -> vector<8x128xf32>
    %c0_59 = arith.constant 0 : index
    %c0_60 = arith.constant 0 : index
    %137 = vector.load %arg5[%c0_59, %c0_60] : memref<1x128xf32, #tpu.memory_space<vmem>>, vector<1x128xf32>
    %138 = vector.broadcast %137 : vector<1x128xf32> to vector<8x128xf32>
    %139 = arith.addf %136, %138 : vector<8x128xf32>
    %c0_61 = arith.constant 0 : index
    %140 = arith.index_cast %113 : i32 to index
    %c0_62 = arith.constant 0 : index
    %141 = vector.load %arg9[%c0_61, %140, %c0_62] : memref<2x64x128xf32, #tpu.memory_space<vmem>>, vector<1x8x128xf32>
    %142 = vector.shape_cast %141 : vector<1x8x128xf32> to vector<8x128xf32>
    %143 = vector.shape_cast %139 : vector<8x128xf32> to vector<1x8x128xf32>
    tpu.vector_store %arg9[%c0_61, %140, %c0_62], %143 {strides = array<i32>} : memref<2x64x128xf32, #tpu.memory_space<vmem>>, vector<1x8x128xf32>,
    %c4_i32 = arith.constant 4 : i32
    %c8_i32_63 = arith.constant 8 : i32
    %144 = arith.muli %c4_i32, %c8_i32_63 : i32
    %145 = tpu.assume_multiple %144, 8 : i32
    %146 = arith.index_cast %145 : i32 to index
    %c0_64 = arith.constant 0 : index
    %147 = vector.load %arg1[%146, %c0_64] : memref<64x128xf32, #tpu.memory_space<vmem>>, vector<8x128xf32>
    %c0_65 = arith.constant 0 : index
    %c0_66 = arith.constant 0 : index
    %148 = vector.load %arg2[%c0_65, %c0_66] : memref<32x128xf32, #tpu.memory_space<vmem>>, vector<32x128xf32>
    %cst_67 = arith.constant dense<0.000000e+00> : vector<8x128xf32>
    %149 = tpu.matmul %134, %148, %cst_67 {dimension_numbers = #tpu.dot_dimension_numbers<[1], [0], [0], [1], [0, 0, 1, 1], [], []>} : vector<8x32xf32>, vector<32x128xf32>, vector<8x128xf32> -> vector<8x128xf32>
    %150 = arith.addf %147, %149 : vector<8x128xf32>
    %151 = arith.mulf %150, %11 : vector<8x128xf32>
    %152 = math.tanh %151 : vector<8x128xf32>
    %cst_68 = arith.constant 1.000000e+00 : f32
    %153 = vector.broadcast %cst_68 : f32 to vector<8x128xf32>
    %154 = arith.addf %152, %153 : vector<8x128xf32>
    %cst_69 = arith.constant 5.000000e-01 : f32
    %155 = vector.broadcast %cst_69 : f32 to vector<8x128xf32>
    %156 = arith.mulf %155, %154 : vector<8x128xf32>
    %157 = arith.select %8, %152, %156 : vector<8x128xi1>, vector<8x128xf32>
    %158 = vector.extract_strided_slice %157 {offsets = [0, 0], sizes = [8, 32], strides = [1, 1]} : vector<8x128xf32> to vector<8x32xf32>
    %159 = vector.extract_strided_slice %157 {offsets = [0, 32], sizes = [8, 32], strides = [1, 1]} : vector<8x128xf32> to vector<8x32xf32>
    %160 = vector.extract_strided_slice %157 {offsets = [0, 64], sizes = [8, 32], strides = [1, 1]} : vector<8x128xf32> to vector<8x32xf32>
    %161 = vector.extract_strided_slice %157 {offsets = [0, 96], sizes = [8, 32], strides = [1, 1]} : vector<8x128xf32> to vector<8x32xf32>
    %162 = arith.mulf %159, %132 : vector<8x32xf32>
    %163 = arith.mulf %158, %160 : vector<8x32xf32>
    %164 = arith.addf %162, %163 : vector<8x32xf32>
    %165 = math.tanh %164 : vector<8x32xf32>
    %166 = arith.mulf %161, %165 : vector<8x32xf32>
    %c0_70 = arith.constant 0 : index
    %c0_71 = arith.constant 0 : index
    %167 = vector.load %arg4[%c0_70, %c0_71] : memref<32x128xf32, #tpu.memory_space<vmem>>, vector<32x128xf32>
    %cst_72 = arith.constant dense<0.000000e+00> : vector<8x128xf32>
    %168 = tpu.matmul %166, %167, %cst_72 {dimension_numbers = #tpu.dot_dimension_numbers<[1], [0], [0], [1], [0, 0, 1, 1], [], []>} : vector<8x32xf32>, vector<32x128xf32>, vector<8x128xf32> -> vector<8x128xf32>
    %c0_73 = arith.constant 0 : index
    %c0_74 = arith.constant 0 : index
    %169 = vector.load %arg5[%c0_73, %c0_74] : memref<1x128xf32, #tpu.memory_space<vmem>>, vector<1x128xf32>
    %170 = vector.broadcast %169 : vector<1x128xf32> to vector<8x128xf32>
    %171 = arith.addf %168, %170 : vector<8x128xf32>
    %c0_75 = arith.constant 0 : index
    %172 = arith.index_cast %145 : i32 to index
    %c0_76 = arith.constant 0 : index
    %173 = vector.load %arg9[%c0_75, %172, %c0_76] : memref<2x64x128xf32, #tpu.memory_space<vmem>>, vector<1x8x128xf32>
    %174 = vector.shape_cast %173 : vector<1x8x128xf32> to vector<8x128xf32>
    %175 = vector.shape_cast %171 : vector<8x128xf32> to vector<1x8x128xf32>
    tpu.vector_store %arg9[%c0_75, %172, %c0_76], %175 {strides = array<i32>} : memref<2x64x128xf32, #tpu.memory_space<vmem>>, vector<1x8x128xf32>,
    %c5_i32 = arith.constant 5 : i32
    %c8_i32_77 = arith.constant 8 : i32
    %176 = arith.muli %c5_i32, %c8_i32_77 : i32
    %177 = tpu.assume_multiple %176, 8 : i32
    %178 = arith.index_cast %177 : i32 to index
    %c0_78 = arith.constant 0 : index
    %179 = vector.load %arg1[%178, %c0_78] : memref<64x128xf32, #tpu.memory_space<vmem>>, vector<8x128xf32>
    %c0_79 = arith.constant 0 : index
    %c0_80 = arith.constant 0 : index
    %180 = vector.load %arg2[%c0_79, %c0_80] : memref<32x128xf32, #tpu.memory_space<vmem>>, vector<32x128xf32>
    %cst_81 = arith.constant dense<0.000000e+00> : vector<8x128xf32>
    %181 = tpu.matmul %166, %180, %cst_81 {dimension_numbers = #tpu.dot_dimension_numbers<[1], [0], [0], [1], [0, 0, 1, 1], [], []>} : vector<8x32xf32>, vector<32x128xf32>, vector<8x128xf32> -> vector<8x128xf32>
    %182 = arith.addf %179, %181 : vector<8x128xf32>
    %183 = arith.mulf %182, %11 : vector<8x128xf32>
    %184 = math.tanh %183 : vector<8x128xf32>
    %cst_82 = arith.constant 1.000000e+00 : f32
    %185 = vector.broadcast %cst_82 : f32 to vector<8x128xf32>
    %186 = arith.addf %184, %185 : vector<8x128xf32>
    %cst_83 = arith.constant 5.000000e-01 : f32
    %187 = vector.broadcast %cst_83 : f32 to vector<8x128xf32>
    %188 = arith.mulf %187, %186 : vector<8x128xf32>
    %189 = arith.select %8, %184, %188 : vector<8x128xi1>, vector<8x128xf32>
    %190 = vector.extract_strided_slice %189 {offsets = [0, 0], sizes = [8, 32], strides = [1, 1]} : vector<8x128xf32> to vector<8x32xf32>
    %191 = vector.extract_strided_slice %189 {offsets = [0, 32], sizes = [8, 32], strides = [1, 1]} : vector<8x128xf32> to vector<8x32xf32>
    %192 = vector.extract_strided_slice %189 {offsets = [0, 64], sizes = [8, 32], strides = [1, 1]} : vector<8x128xf32> to vector<8x32xf32>
    %193 = vector.extract_strided_slice %189 {offsets = [0, 96], sizes = [8, 32], strides = [1, 1]} : vector<8x128xf32> to vector<8x32xf32>
    %194 = arith.mulf %191, %164 : vector<8x32xf32>
    %195 = arith.mulf %190, %192 : vector<8x32xf32>
    %196 = arith.addf %194, %195 : vector<8x32xf32>
    %197 = math.tanh %196 : vector<8x32xf32>
    %198 = arith.mulf %193, %197 : vector<8x32xf32>
    %c0_84 = arith.constant 0 : index
    %c0_85 = arith.constant 0 : index
    %199 = vector.load %arg4[%c0_84, %c0_85] : memref<32x128xf32, #tpu.memory_space<vmem>>, vector<32x128xf32>
    %cst_86 = arith.constant dense<0.000000e+00> : vector<8x128xf32>
    %200 = tpu.matmul %198, %199, %cst_86 {dimension_numbers = #tpu.dot_dimension_numbers<[1], [0], [0], [1], [0, 0, 1, 1], [], []>} : vector<8x32xf32>, vector<32x128xf32>, vector<8x128xf32> -> vector<8x128xf32>
    %c0_87 = arith.constant 0 : index
    %c0_88 = arith.constant 0 : index
    %201 = vector.load %arg5[%c0_87, %c0_88] : memref<1x128xf32, #tpu.memory_space<vmem>>, vector<1x128xf32>
    %202 = vector.broadcast %201 : vector<1x128xf32> to vector<8x128xf32>
    %203 = arith.addf %200, %202 : vector<8x128xf32>
    %c0_89 = arith.constant 0 : index
    %204 = arith.index_cast %177 : i32 to index
    %c0_90 = arith.constant 0 : index
    %205 = vector.load %arg9[%c0_89, %204, %c0_90] : memref<2x64x128xf32, #tpu.memory_space<vmem>>, vector<1x8x128xf32>
    %206 = vector.shape_cast %205 : vector<1x8x128xf32> to vector<8x128xf32>
    %207 = vector.shape_cast %203 : vector<8x128xf32> to vector<1x8x128xf32>
    tpu.vector_store %arg9[%c0_89, %204, %c0_90], %207 {strides = array<i32>} : memref<2x64x128xf32, #tpu.memory_space<vmem>>, vector<1x8x128xf32>,
    %c6_i32 = arith.constant 6 : i32
    %c8_i32_91 = arith.constant 8 : i32
    %208 = arith.muli %c6_i32, %c8_i32_91 : i32
    %209 = tpu.assume_multiple %208, 8 : i32
    %210 = arith.index_cast %209 : i32 to index
    %c0_92 = arith.constant 0 : index
    %211 = vector.load %arg1[%210, %c0_92] : memref<64x128xf32, #tpu.memory_space<vmem>>, vector<8x128xf32>
    %c0_93 = arith.constant 0 : index
    %c0_94 = arith.constant 0 : index
    %212 = vector.load %arg2[%c0_93, %c0_94] : memref<32x128xf32, #tpu.memory_space<vmem>>, vector<32x128xf32>
    %cst_95 = arith.constant dense<0.000000e+00> : vector<8x128xf32>
    %213 = tpu.matmul %198, %212, %cst_95 {dimension_numbers = #tpu.dot_dimension_numbers<[1], [0], [0], [1], [0, 0, 1, 1], [], []>} : vector<8x32xf32>, vector<32x128xf32>, vector<8x128xf32> -> vector<8x128xf32>
    %214 = arith.addf %211, %213 : vector<8x128xf32>
    %215 = arith.mulf %214, %11 : vector<8x128xf32>
    %216 = math.tanh %215 : vector<8x128xf32>
    %cst_96 = arith.constant 1.000000e+00 : f32
    %217 = vector.broadcast %cst_96 : f32 to vector<8x128xf32>
    %218 = arith.addf %216, %217 : vector<8x128xf32>
    %cst_97 = arith.constant 5.000000e-01 : f32
    %219 = vector.broadcast %cst_97 : f32 to vector<8x128xf32>
    %220 = arith.mulf %219, %218 : vector<8x128xf32>
    %221 = arith.select %8, %216, %220 : vector<8x128xi1>, vector<8x128xf32>
    %222 = vector.extract_strided_slice %221 {offsets = [0, 0], sizes = [8, 32], strides = [1, 1]} : vector<8x128xf32> to vector<8x32xf32>
    %223 = vector.extract_strided_slice %221 {offsets = [0, 32], sizes = [8, 32], strides = [1, 1]} : vector<8x128xf32> to vector<8x32xf32>
    %224 = vector.extract_strided_slice %221 {offsets = [0, 64], sizes = [8, 32], strides = [1, 1]} : vector<8x128xf32> to vector<8x32xf32>
    %225 = vector.extract_strided_slice %221 {offsets = [0, 96], sizes = [8, 32], strides = [1, 1]} : vector<8x128xf32> to vector<8x32xf32>
    %226 = arith.mulf %223, %196 : vector<8x32xf32>
    %227 = arith.mulf %222, %224 : vector<8x32xf32>
    %228 = arith.addf %226, %227 : vector<8x32xf32>
    %229 = math.tanh %228 : vector<8x32xf32>
    %230 = arith.mulf %225, %229 : vector<8x32xf32>
    %c0_98 = arith.constant 0 : index
    %c0_99 = arith.constant 0 : index
    %231 = vector.load %arg4[%c0_98, %c0_99] : memref<32x128xf32, #tpu.memory_space<vmem>>, vector<32x128xf32>
    %cst_100 = arith.constant dense<0.000000e+00> : vector<8x128xf32>
    %232 = tpu.matmul %230, %231, %cst_100 {dimension_numbers = #tpu.dot_dimension_numbers<[1], [0], [0], [1], [0, 0, 1, 1], [], []>} : vector<8x32xf32>, vector<32x128xf32>, vector<8x128xf32> -> vector<8x128xf32>
    %c0_101 = arith.constant 0 : index
    %c0_102 = arith.constant 0 : index
    %233 = vector.load %arg5[%c0_101, %c0_102] : memref<1x128xf32, #tpu.memory_space<vmem>>, vector<1x128xf32>
    %234 = vector.broadcast %233 : vector<1x128xf32> to vector<8x128xf32>
    %235 = arith.addf %232, %234 : vector<8x128xf32>
    %c0_103 = arith.constant 0 : index
    %236 = arith.index_cast %209 : i32 to index
    %c0_104 = arith.constant 0 : index
    %237 = vector.load %arg9[%c0_103, %236, %c0_104] : memref<2x64x128xf32, #tpu.memory_space<vmem>>, vector<1x8x128xf32>
    %238 = vector.shape_cast %237 : vector<1x8x128xf32> to vector<8x128xf32>
    %239 = vector.shape_cast %235 : vector<8x128xf32> to vector<1x8x128xf32>
    tpu.vector_store %arg9[%c0_103, %236, %c0_104], %239 {strides = array<i32>} : memref<2x64x128xf32, #tpu.memory_space<vmem>>, vector<1x8x128xf32>,
    %c7_i32 = arith.constant 7 : i32
    %c8_i32_105 = arith.constant 8 : i32
    %240 = arith.muli %c7_i32, %c8_i32_105 : i32
    %241 = tpu.assume_multiple %240, 8 : i32
    %242 = arith.index_cast %241 : i32 to index
    %c0_106 = arith.constant 0 : index
    %243 = vector.load %arg1[%242, %c0_106] : memref<64x128xf32, #tpu.memory_space<vmem>>, vector<8x128xf32>
    %c0_107 = arith.constant 0 : index
    %c0_108 = arith.constant 0 : index
    %244 = vector.load %arg2[%c0_107, %c0_108] : memref<32x128xf32, #tpu.memory_space<vmem>>, vector<32x128xf32>
    %cst_109 = arith.constant dense<0.000000e+00> : vector<8x128xf32>
    %245 = tpu.matmul %230, %244, %cst_109 {dimension_numbers = #tpu.dot_dimension_numbers<[1], [0], [0], [1], [0, 0, 1, 1], [], []>} : vector<8x32xf32>, vector<32x128xf32>, vector<8x128xf32> -> vector<8x128xf32>
    %246 = arith.addf %243, %245 : vector<8x128xf32>
    %247 = arith.mulf %246, %11 : vector<8x128xf32>
    %248 = math.tanh %247 : vector<8x128xf32>
    %cst_110 = arith.constant 1.000000e+00 : f32
    %249 = vector.broadcast %cst_110 : f32 to vector<8x128xf32>
    %250 = arith.addf %248, %249 : vector<8x128xf32>
    %cst_111 = arith.constant 5.000000e-01 : f32
    %251 = vector.broadcast %cst_111 : f32 to vector<8x128xf32>
    %252 = arith.mulf %251, %250 : vector<8x128xf32>
    %253 = arith.select %8, %248, %252 : vector<8x128xi1>, vector<8x128xf32>
    %254 = vector.extract_strided_slice %253 {offsets = [0, 0], sizes = [8, 32], strides = [1, 1]} : vector<8x128xf32> to vector<8x32xf32>
    %255 = vector.extract_strided_slice %253 {offsets = [0, 32], sizes = [8, 32], strides = [1, 1]} : vector<8x128xf32> to vector<8x32xf32>
    %256 = vector.extract_strided_slice %253 {offsets = [0, 64], sizes = [8, 32], strides = [1, 1]} : vector<8x128xf32> to vector<8x32xf32>
    %257 = vector.extract_strided_slice %253 {offsets = [0, 96], sizes = [8, 32], strides = [1, 1]} : vector<8x128xf32> to vector<8x32xf32>
    %258 = arith.mulf %255, %228 : vector<8x32xf32>
    %259 = arith.mulf %254, %256 : vector<8x32xf32>
    %260 = arith.addf %258, %259 : vector<8x32xf32>
    %261 = math.tanh %260 : vector<8x32xf32>
    %262 = arith.mulf %257, %261 : vector<8x32xf32>
    %c0_112 = arith.constant 0 : index
    %c0_113 = arith.constant 0 : index
    %263 = vector.load %arg4[%c0_112, %c0_113] : memref<32x128xf32, #tpu.memory_space<vmem>>, vector<32x128xf32>
    %cst_114 = arith.constant dense<0.000000e+00> : vector<8x128xf32>
    %264 = tpu.matmul %262, %263, %cst_114 {dimension_numbers = #tpu.dot_dimension_numbers<[1], [0], [0], [1], [0, 0, 1, 1], [], []>} : vector<8x32xf32>, vector<32x128xf32>, vector<8x128xf32> -> vector<8x128xf32>
    %c0_115 = arith.constant 0 : index
    %c0_116 = arith.constant 0 : index
    %265 = vector.load %arg5[%c0_115, %c0_116] : memref<1x128xf32, #tpu.memory_space<vmem>>, vector<1x128xf32>
    %266 = vector.broadcast %265 : vector<1x128xf32> to vector<8x128xf32>
    %267 = arith.addf %264, %266 : vector<8x128xf32>
    %c0_117 = arith.constant 0 : index
    %268 = arith.index_cast %241 : i32 to index
    %c0_118 = arith.constant 0 : index
    %269 = vector.load %arg9[%c0_117, %268, %c0_118] : memref<2x64x128xf32, #tpu.memory_space<vmem>>, vector<1x8x128xf32>
    %270 = vector.shape_cast %269 : vector<1x8x128xf32> to vector<8x128xf32>
    %271 = vector.shape_cast %267 : vector<8x128xf32> to vector<1x8x128xf32>
    tpu.vector_store %arg9[%c0_117, %268, %c0_118], %271 {strides = array<i32>} : memref<2x64x128xf32, #tpu.memory_space<vmem>>, vector<1x8x128xf32>,
    %c8_i32_119 = arith.constant 8 : i32
    %c0_120 = arith.constant 0 : index
    %c0_121 = arith.constant 0 : index
    %c0_122 = arith.constant 0 : index
    %272 = vector.load %arg7[%c0_120, %c0_121, %c0_122] : memref<2x8x32xf32, #tpu.memory_space<vmem>>, vector<1x8x32xf32>
    %273 = vector.shape_cast %272 : vector<1x8x32xf32> to vector<8x32xf32>
    %274 = vector.shape_cast %262 : vector<8x32xf32> to vector<1x8x32xf32>
    tpu.vector_store %arg7[%c0_120, %c0_121, %c0_122], %274 {strides = array<i32>} : memref<2x8x32xf32, #tpu.memory_space<vmem>>, vector<1x8x32xf32>,
    %c0_123 = arith.constant 0 : index
    %c0_124 = arith.constant 0 : index
    %c0_125 = arith.constant 0 : index
    %275 = vector.load %arg8[%c0_123, %c0_124, %c0_125] : memref<2x8x32xf32, #tpu.memory_space<vmem>>, vector<1x8x32xf32>
    %276 = vector.shape_cast %275 : vector<1x8x32xf32> to vector<8x32xf32>
    %277 = vector.shape_cast %260 : vector<8x32xf32> to vector<1x8x32xf32>
    tpu.vector_store %arg8[%c0_123, %c0_124, %c0_125], %277 {strides = array<i32>} : memref<2x8x32xf32, #tpu.memory_space<vmem>>, vector<1x8x32xf32>,
    %c1 = arith.constant 1 : index
    %c0_126 = arith.constant 0 : index
    %c0_127 = arith.constant 0 : index
    %278 = vector.load %arg7[%c1, %c0_126, %c0_127] : memref<2x8x32xf32, #tpu.memory_space<vmem>>, vector<1x8x32xf32>
    %279 = vector.shape_cast %278 : vector<1x8x32xf32> to vector<8x32xf32>
    %c1_128 = arith.constant 1 : index
    %c0_129 = arith.constant 0 : index
    %c0_130 = arith.constant 0 : index
    %280 = vector.load %arg8[%c1_128, %c0_129, %c0_130] : memref<2x8x32xf32, #tpu.memory_space<vmem>>, vector<1x8x32xf32>
    %281 = vector.shape_cast %280 : vector<1x8x32xf32> to vector<8x32xf32>
    %c0_i32_131 = arith.constant 0 : i32
    %c8_i32_132 = arith.constant 8 : i32
    %282 = arith.muli %c0_i32_131, %c8_i32_132 : i32
    %283 = tpu.assume_multiple %282, 8 : i32
    %c0_133 = arith.constant 0 : index
    %284 = arith.index_cast %283 : i32 to index
    %c0_134 = arith.constant 0 : index
    %285 = vector.load %arg9[%c0_133, %284, %c0_134] : memref<2x64x128xf32, #tpu.memory_space<vmem>>, vector<1x8x128xf32>
    %286 = vector.shape_cast %285 : vector<1x8x128xf32> to vector<8x128xf32>
    %c0_135 = arith.constant 0 : index
    %c0_136 = arith.constant 0 : index
    %287 = vector.load %arg3[%c0_135, %c0_136] : memref<32x128xf32, #tpu.memory_space<vmem>>, vector<32x128xf32>
    %cst_137 = arith.constant dense<0.000000e+00> : vector<8x128xf32>
    %288 = tpu.matmul %279, %287, %cst_137 {dimension_numbers = #tpu.dot_dimension_numbers<[1], [0], [0], [1], [0, 0, 1, 1], [], []>} : vector<8x32xf32>, vector<32x128xf32>, vector<8x128xf32> -> vector<8x128xf32>
    %289 = arith.addf %286, %288 : vector<8x128xf32>
    %290 = arith.mulf %289, %11 : vector<8x128xf32>
    %291 = math.tanh %290 : vector<8x128xf32>
    %cst_138 = arith.constant 1.000000e+00 : f32
    %292 = vector.broadcast %cst_138 : f32 to vector<8x128xf32>
    %293 = arith.addf %291, %292 : vector<8x128xf32>
    %cst_139 = arith.constant 5.000000e-01 : f32
    %294 = vector.broadcast %cst_139 : f32 to vector<8x128xf32>
    %295 = arith.mulf %294, %293 : vector<8x128xf32>
    %296 = arith.select %8, %291, %295 : vector<8x128xi1>, vector<8x128xf32>
    %297 = vector.extract_strided_slice %296 {offsets = [0, 0], sizes = [8, 32], strides = [1, 1]} : vector<8x128xf32> to vector<8x32xf32>
    %298 = vector.extract_strided_slice %296 {offsets = [0, 32], sizes = [8, 32], strides = [1, 1]} : vector<8x128xf32> to vector<8x32xf32>
    %299 = vector.extract_strided_slice %296 {offsets = [0, 64], sizes = [8, 32], strides = [1, 1]} : vector<8x128xf32> to vector<8x32xf32>
    %300 = vector.extract_strided_slice %296 {offsets = [0, 96], sizes = [8, 32], strides = [1, 1]} : vector<8x128xf32> to vector<8x32xf32>
    %301 = arith.mulf %298, %281 : vector<8x32xf32>
    %302 = arith.mulf %297, %299 : vector<8x32xf32>
    %303 = arith.addf %301, %302 : vector<8x32xf32>
    %304 = math.tanh %303 : vector<8x32xf32>
    %305 = arith.mulf %300, %304 : vector<8x32xf32>
    %306 = arith.index_cast %283 : i32 to index
    %c0_140 = arith.constant 0 : index
    %307 = vector.load %arg6[%306, %c0_140] : memref<64x32xf32, #tpu.memory_space<vmem>>, vector<8x32xf32>
    tpu.vector_store %arg6[%306, %c0_140], %305 {strides = array<i32>} : memref<64x32xf32, #tpu.memory_space<vmem>>, vector<8x32xf32>,
    %c1_i32_141 = arith.constant 1 : i32
    %c8_i32_142 = arith.constant 8 : i32
    %308 = arith.muli %c1_i32_141, %c8_i32_142 : i32
    %309 = tpu.assume_multiple %308, 8 : i32
    %c0_143 = arith.constant 0 : index
    %310 = arith.index_cast %309 : i32 to index
    %c0_144 = arith.constant 0 : index
    %311 = vector.load %arg9[%c0_143, %310, %c0_144] : memref<2x64x128xf32, #tpu.memory_space<vmem>>, vector<1x8x128xf32>
    %312 = vector.shape_cast %311 : vector<1x8x128xf32> to vector<8x128xf32>
    %c0_145 = arith.constant 0 : index
    %c0_146 = arith.constant 0 : index
    %313 = vector.load %arg3[%c0_145, %c0_146] : memref<32x128xf32, #tpu.memory_space<vmem>>, vector<32x128xf32>
    %cst_147 = arith.constant dense<0.000000e+00> : vector<8x128xf32>
    %314 = tpu.matmul %305, %313, %cst_147 {dimension_numbers = #tpu.dot_dimension_numbers<[1], [0], [0], [1], [0, 0, 1, 1], [], []>} : vector<8x32xf32>, vector<32x128xf32>, vector<8x128xf32> -> vector<8x128xf32>
    %315 = arith.addf %312, %314 : vector<8x128xf32>
    %316 = arith.mulf %315, %11 : vector<8x128xf32>
    %317 = math.tanh %316 : vector<8x128xf32>
    %cst_148 = arith.constant 1.000000e+00 : f32
    %318 = vector.broadcast %cst_148 : f32 to vector<8x128xf32>
    %319 = arith.addf %317, %318 : vector<8x128xf32>
    %cst_149 = arith.constant 5.000000e-01 : f32
    %320 = vector.broadcast %cst_149 : f32 to vector<8x128xf32>
    %321 = arith.mulf %320, %319 : vector<8x128xf32>
    %322 = arith.select %8, %317, %321 : vector<8x128xi1>, vector<8x128xf32>
    %323 = vector.extract_strided_slice %322 {offsets = [0, 0], sizes = [8, 32], strides = [1, 1]} : vector<8x128xf32> to vector<8x32xf32>
    %324 = vector.extract_strided_slice %322 {offsets = [0, 32], sizes = [8, 32], strides = [1, 1]} : vector<8x128xf32> to vector<8x32xf32>
    %325 = vector.extract_strided_slice %322 {offsets = [0, 64], sizes = [8, 32], strides = [1, 1]} : vector<8x128xf32> to vector<8x32xf32>
    %326 = vector.extract_strided_slice %322 {offsets = [0, 96], sizes = [8, 32], strides = [1, 1]} : vector<8x128xf32> to vector<8x32xf32>
    %327 = arith.mulf %324, %303 : vector<8x32xf32>
    %328 = arith.mulf %323, %325 : vector<8x32xf32>
    %329 = arith.addf %327, %328 : vector<8x32xf32>
    %330 = math.tanh %329 : vector<8x32xf32>
    %331 = arith.mulf %326, %330 : vector<8x32xf32>
    %332 = arith.index_cast %309 : i32 to index
    %c0_150 = arith.constant 0 : index
    %333 = vector.load %arg6[%332, %c0_150] : memref<64x32xf32, #tpu.memory_space<vmem>>, vector<8x32xf32>
    tpu.vector_store %arg6[%332, %c0_150], %331 {strides = array<i32>} : memref<64x32xf32, #tpu.memory_space<vmem>>, vector<8x32xf32>,
    %c2_i32_151 = arith.constant 2 : i32
    %c8_i32_152 = arith.constant 8 : i32
    %334 = arith.muli %c2_i32_151, %c8_i32_152 : i32
    %335 = tpu.assume_multiple %334, 8 : i32
    %c0_153 = arith.constant 0 : index
    %336 = arith.index_cast %335 : i32 to index
    %c0_154 = arith.constant 0 : index
    %337 = vector.load %arg9[%c0_153, %336, %c0_154] : memref<2x64x128xf32, #tpu.memory_space<vmem>>, vector<1x8x128xf32>
    %338 = vector.shape_cast %337 : vector<1x8x128xf32> to vector<8x128xf32>
    %c0_155 = arith.constant 0 : index
    %c0_156 = arith.constant 0 : index
    %339 = vector.load %arg3[%c0_155, %c0_156] : memref<32x128xf32, #tpu.memory_space<vmem>>, vector<32x128xf32>
    %cst_157 = arith.constant dense<0.000000e+00> : vector<8x128xf32>
    %340 = tpu.matmul %331, %339, %cst_157 {dimension_numbers = #tpu.dot_dimension_numbers<[1], [0], [0], [1], [0, 0, 1, 1], [], []>} : vector<8x32xf32>, vector<32x128xf32>, vector<8x128xf32> -> vector<8x128xf32>
    %341 = arith.addf %338, %340 : vector<8x128xf32>
    %342 = arith.mulf %341, %11 : vector<8x128xf32>
    %343 = math.tanh %342 : vector<8x128xf32>
    %cst_158 = arith.constant 1.000000e+00 : f32
    %344 = vector.broadcast %cst_158 : f32 to vector<8x128xf32>
    %345 = arith.addf %343, %344 : vector<8x128xf32>
    %cst_159 = arith.constant 5.000000e-01 : f32
    %346 = vector.broadcast %cst_159 : f32 to vector<8x128xf32>
    %347 = arith.mulf %346, %345 : vector<8x128xf32>
    %348 = arith.select %8, %343, %347 : vector<8x128xi1>, vector<8x128xf32>
    %349 = vector.extract_strided_slice %348 {offsets = [0, 0], sizes = [8, 32], strides = [1, 1]} : vector<8x128xf32> to vector<8x32xf32>
    %350 = vector.extract_strided_slice %348 {offsets = [0, 32], sizes = [8, 32], strides = [1, 1]} : vector<8x128xf32> to vector<8x32xf32>
    %351 = vector.extract_strided_slice %348 {offsets = [0, 64], sizes = [8, 32], strides = [1, 1]} : vector<8x128xf32> to vector<8x32xf32>
    %352 = vector.extract_strided_slice %348 {offsets = [0, 96], sizes = [8, 32], strides = [1, 1]} : vector<8x128xf32> to vector<8x32xf32>
    %353 = arith.mulf %350, %329 : vector<8x32xf32>
    %354 = arith.mulf %349, %351 : vector<8x32xf32>
    %355 = arith.addf %353, %354 : vector<8x32xf32>
    %356 = math.tanh %355 : vector<8x32xf32>
    %357 = arith.mulf %352, %356 : vector<8x32xf32>
    %358 = arith.index_cast %335 : i32 to index
    %c0_160 = arith.constant 0 : index
    %359 = vector.load %arg6[%358, %c0_160] : memref<64x32xf32, #tpu.memory_space<vmem>>, vector<8x32xf32>
    tpu.vector_store %arg6[%358, %c0_160], %357 {strides = array<i32>} : memref<64x32xf32, #tpu.memory_space<vmem>>, vector<8x32xf32>,
    %c3_i32_161 = arith.constant 3 : i32
    %c8_i32_162 = arith.constant 8 : i32
    %360 = arith.muli %c3_i32_161, %c8_i32_162 : i32
    %361 = tpu.assume_multiple %360, 8 : i32
    %c0_163 = arith.constant 0 : index
    %362 = arith.index_cast %361 : i32 to index
    %c0_164 = arith.constant 0 : index
    %363 = vector.load %arg9[%c0_163, %362, %c0_164] : memref<2x64x128xf32, #tpu.memory_space<vmem>>, vector<1x8x128xf32>
    %364 = vector.shape_cast %363 : vector<1x8x128xf32> to vector<8x128xf32>
    %c0_165 = arith.constant 0 : index
    %c0_166 = arith.constant 0 : index
    %365 = vector.load %arg3[%c0_165, %c0_166] : memref<32x128xf32, #tpu.memory_space<vmem>>, vector<32x128xf32>
    %cst_167 = arith.constant dense<0.000000e+00> : vector<8x128xf32>
    %366 = tpu.matmul %357, %365, %cst_167 {dimension_numbers = #tpu.dot_dimension_numbers<[1], [0], [0], [1], [0, 0, 1, 1], [], []>} : vector<8x32xf32>, vector<32x128xf32>, vector<8x128xf32> -> vector<8x128xf32>
    %367 = arith.addf %364, %366 : vector<8x128xf32>
    %368 = arith.mulf %367, %11 : vector<8x128xf32>
    %369 = math.tanh %368 : vector<8x128xf32>
    %cst_168 = arith.constant 1.000000e+00 : f32
    %370 = vector.broadcast %cst_168 : f32 to vector<8x128xf32>
    %371 = arith.addf %369, %370 : vector<8x128xf32>
    %cst_169 = arith.constant 5.000000e-01 : f32
    %372 = vector.broadcast %cst_169 : f32 to vector<8x128xf32>
    %373 = arith.mulf %372, %371 : vector<8x128xf32>
    %374 = arith.select %8, %369, %373 : vector<8x128xi1>, vector<8x128xf32>
    %375 = vector.extract_strided_slice %374 {offsets = [0, 0], sizes = [8, 32], strides = [1, 1]} : vector<8x128xf32> to vector<8x32xf32>
    %376 = vector.extract_strided_slice %374 {offsets = [0, 32], sizes = [8, 32], strides = [1, 1]} : vector<8x128xf32> to vector<8x32xf32>
    %377 = vector.extract_strided_slice %374 {offsets = [0, 64], sizes = [8, 32], strides = [1, 1]} : vector<8x128xf32> to vector<8x32xf32>
    %378 = vector.extract_strided_slice %374 {offsets = [0, 96], sizes = [8, 32], strides = [1, 1]} : vector<8x128xf32> to vector<8x32xf32>
    %379 = arith.mulf %376, %355 : vector<8x32xf32>
    %380 = arith.mulf %375, %377 : vector<8x32xf32>
    %381 = arith.addf %379, %380 : vector<8x32xf32>
    %382 = math.tanh %381 : vector<8x32xf32>
    %383 = arith.mulf %378, %382 : vector<8x32xf32>
    %384 = arith.index_cast %361 : i32 to index
    %c0_170 = arith.constant 0 : index
    %385 = vector.load %arg6[%384, %c0_170] : memref<64x32xf32, #tpu.memory_space<vmem>>, vector<8x32xf32>
    tpu.vector_store %arg6[%384, %c0_170], %383 {strides = array<i32>} : memref<64x32xf32, #tpu.memory_space<vmem>>, vector<8x32xf32>,
    %c4_i32_171 = arith.constant 4 : i32
    %c8_i32_172 = arith.constant 8 : i32
    %386 = arith.muli %c4_i32_171, %c8_i32_172 : i32
    %387 = tpu.assume_multiple %386, 8 : i32
    %c0_173 = arith.constant 0 : index
    %388 = arith.index_cast %387 : i32 to index
    %c0_174 = arith.constant 0 : index
    %389 = vector.load %arg9[%c0_173, %388, %c0_174] : memref<2x64x128xf32, #tpu.memory_space<vmem>>, vector<1x8x128xf32>
    %390 = vector.shape_cast %389 : vector<1x8x128xf32> to vector<8x128xf32>
    %c0_175 = arith.constant 0 : index
    %c0_176 = arith.constant 0 : index
    %391 = vector.load %arg3[%c0_175, %c0_176] : memref<32x128xf32, #tpu.memory_space<vmem>>, vector<32x128xf32>
    %cst_177 = arith.constant dense<0.000000e+00> : vector<8x128xf32>
    %392 = tpu.matmul %383, %391, %cst_177 {dimension_numbers = #tpu.dot_dimension_numbers<[1], [0], [0], [1], [0, 0, 1, 1], [], []>} : vector<8x32xf32>, vector<32x128xf32>, vector<8x128xf32> -> vector<8x128xf32>
    %393 = arith.addf %390, %392 : vector<8x128xf32>
    %394 = arith.mulf %393, %11 : vector<8x128xf32>
    %395 = math.tanh %394 : vector<8x128xf32>
    %cst_178 = arith.constant 1.000000e+00 : f32
    %396 = vector.broadcast %cst_178 : f32 to vector<8x128xf32>
    %397 = arith.addf %395, %396 : vector<8x128xf32>
    %cst_179 = arith.constant 5.000000e-01 : f32
    %398 = vector.broadcast %cst_179 : f32 to vector<8x128xf32>
    %399 = arith.mulf %398, %397 : vector<8x128xf32>
    %400 = arith.select %8, %395, %399 : vector<8x128xi1>, vector<8x128xf32>
    %401 = vector.extract_strided_slice %400 {offsets = [0, 0], sizes = [8, 32], strides = [1, 1]} : vector<8x128xf32> to vector<8x32xf32>
    %402 = vector.extract_strided_slice %400 {offsets = [0, 32], sizes = [8, 32], strides = [1, 1]} : vector<8x128xf32> to vector<8x32xf32>
    %403 = vector.extract_strided_slice %400 {offsets = [0, 64], sizes = [8, 32], strides = [1, 1]} : vector<8x128xf32> to vector<8x32xf32>
    %404 = vector.extract_strided_slice %400 {offsets = [0, 96], sizes = [8, 32], strides = [1, 1]} : vector<8x128xf32> to vector<8x32xf32>
    %405 = arith.mulf %402, %381 : vector<8x32xf32>
    %406 = arith.mulf %401, %403 : vector<8x32xf32>
    %407 = arith.addf %405, %406 : vector<8x32xf32>
    %408 = math.tanh %407 : vector<8x32xf32>
    %409 = arith.mulf %404, %408 : vector<8x32xf32>
    %410 = arith.index_cast %387 : i32 to index
    %c0_180 = arith.constant 0 : index
    %411 = vector.load %arg6[%410, %c0_180] : memref<64x32xf32, #tpu.memory_space<vmem>>, vector<8x32xf32>
    tpu.vector_store %arg6[%410, %c0_180], %409 {strides = array<i32>} : memref<64x32xf32, #tpu.memory_space<vmem>>, vector<8x32xf32>,
    %c5_i32_181 = arith.constant 5 : i32
    %c8_i32_182 = arith.constant 8 : i32
    %412 = arith.muli %c5_i32_181, %c8_i32_182 : i32
    %413 = tpu.assume_multiple %412, 8 : i32
    %c0_183 = arith.constant 0 : index
    %414 = arith.index_cast %413 : i32 to index
    %c0_184 = arith.constant 0 : index
    %415 = vector.load %arg9[%c0_183, %414, %c0_184] : memref<2x64x128xf32, #tpu.memory_space<vmem>>, vector<1x8x128xf32>
    %416 = vector.shape_cast %415 : vector<1x8x128xf32> to vector<8x128xf32>
    %c0_185 = arith.constant 0 : index
    %c0_186 = arith.constant 0 : index
    %417 = vector.load %arg3[%c0_185, %c0_186] : memref<32x128xf32, #tpu.memory_space<vmem>>, vector<32x128xf32>
    %cst_187 = arith.constant dense<0.000000e+00> : vector<8x128xf32>
    %418 = tpu.matmul %409, %417, %cst_187 {dimension_numbers = #tpu.dot_dimension_numbers<[1], [0], [0], [1], [0, 0, 1, 1], [], []>} : vector<8x32xf32>, vector<32x128xf32>, vector<8x128xf32> -> vector<8x128xf32>
    %419 = arith.addf %416, %418 : vector<8x128xf32>
    %420 = arith.mulf %419, %11 : vector<8x128xf32>
    %421 = math.tanh %420 : vector<8x128xf32>
    %cst_188 = arith.constant 1.000000e+00 : f32
    %422 = vector.broadcast %cst_188 : f32 to vector<8x128xf32>
    %423 = arith.addf %421, %422 : vector<8x128xf32>
    %cst_189 = arith.constant 5.000000e-01 : f32
    %424 = vector.broadcast %cst_189 : f32 to vector<8x128xf32>
    %425 = arith.mulf %424, %423 : vector<8x128xf32>
    %426 = arith.select %8, %421, %425 : vector<8x128xi1>, vector<8x128xf32>
    %427 = vector.extract_strided_slice %426 {offsets = [0, 0], sizes = [8, 32], strides = [1, 1]} : vector<8x128xf32> to vector<8x32xf32>
    %428 = vector.extract_strided_slice %426 {offsets = [0, 32], sizes = [8, 32], strides = [1, 1]} : vector<8x128xf32> to vector<8x32xf32>
    %429 = vector.extract_strided_slice %426 {offsets = [0, 64], sizes = [8, 32], strides = [1, 1]} : vector<8x128xf32> to vector<8x32xf32>
    %430 = vector.extract_strided_slice %426 {offsets = [0, 96], sizes = [8, 32], strides = [1, 1]} : vector<8x128xf32> to vector<8x32xf32>
    %431 = arith.mulf %428, %407 : vector<8x32xf32>
    %432 = arith.mulf %427, %429 : vector<8x32xf32>
    %433 = arith.addf %431, %432 : vector<8x32xf32>
    %434 = math.tanh %433 : vector<8x32xf32>
    %435 = arith.mulf %430, %434 : vector<8x32xf32>
    %436 = arith.index_cast %413 : i32 to index
    %c0_190 = arith.constant 0 : index
    %437 = vector.load %arg6[%436, %c0_190] : memref<64x32xf32, #tpu.memory_space<vmem>>, vector<8x32xf32>
    tpu.vector_store %arg6[%436, %c0_190], %435 {strides = array<i32>} : memref<64x32xf32, #tpu.memory_space<vmem>>, vector<8x32xf32>,
    %c6_i32_191 = arith.constant 6 : i32
    %c8_i32_192 = arith.constant 8 : i32
    %438 = arith.muli %c6_i32_191, %c8_i32_192 : i32
    %439 = tpu.assume_multiple %438, 8 : i32
    %c0_193 = arith.constant 0 : index
    %440 = arith.index_cast %439 : i32 to index
    %c0_194 = arith.constant 0 : index
    %441 = vector.load %arg9[%c0_193, %440, %c0_194] : memref<2x64x128xf32, #tpu.memory_space<vmem>>, vector<1x8x128xf32>
    %442 = vector.shape_cast %441 : vector<1x8x128xf32> to vector<8x128xf32>
    %c0_195 = arith.constant 0 : index
    %c0_196 = arith.constant 0 : index
    %443 = vector.load %arg3[%c0_195, %c0_196] : memref<32x128xf32, #tpu.memory_space<vmem>>, vector<32x128xf32>
    %cst_197 = arith.constant dense<0.000000e+00> : vector<8x128xf32>
    %444 = tpu.matmul %435, %443, %cst_197 {dimension_numbers = #tpu.dot_dimension_numbers<[1], [0], [0], [1], [0, 0, 1, 1], [], []>} : vector<8x32xf32>, vector<32x128xf32>, vector<8x128xf32> -> vector<8x128xf32>
    %445 = arith.addf %442, %444 : vector<8x128xf32>
    %446 = arith.mulf %445, %11 : vector<8x128xf32>
    %447 = math.tanh %446 : vector<8x128xf32>
    %cst_198 = arith.constant 1.000000e+00 : f32
    %448 = vector.broadcast %cst_198 : f32 to vector<8x128xf32>
    %449 = arith.addf %447, %448 : vector<8x128xf32>
    %cst_199 = arith.constant 5.000000e-01 : f32
    %450 = vector.broadcast %cst_199 : f32 to vector<8x128xf32>
    %451 = arith.mulf %450, %449 : vector<8x128xf32>
    %452 = arith.select %8, %447, %451 : vector<8x128xi1>, vector<8x128xf32>
    %453 = vector.extract_strided_slice %452 {offsets = [0, 0], sizes = [8, 32], strides = [1, 1]} : vector<8x128xf32> to vector<8x32xf32>
    %454 = vector.extract_strided_slice %452 {offsets = [0, 32], sizes = [8, 32], strides = [1, 1]} : vector<8x128xf32> to vector<8x32xf32>
    %455 = vector.extract_strided_slice %452 {offsets = [0, 64], sizes = [8, 32], strides = [1, 1]} : vector<8x128xf32> to vector<8x32xf32>
    %456 = vector.extract_strided_slice %452 {offsets = [0, 96], sizes = [8, 32], strides = [1, 1]} : vector<8x128xf32> to vector<8x32xf32>
    %457 = arith.mulf %454, %433 : vector<8x32xf32>
    %458 = arith.mulf %453, %455 : vector<8x32xf32>
    %459 = arith.addf %457, %458 : vector<8x32xf32>
    %460 = math.tanh %459 : vector<8x32xf32>
    %461 = arith.mulf %456, %460 : vector<8x32xf32>
    %462 = arith.index_cast %439 : i32 to index
    %c0_200 = arith.constant 0 : index
    %463 = vector.load %arg6[%462, %c0_200] : memref<64x32xf32, #tpu.memory_space<vmem>>, vector<8x32xf32>
    tpu.vector_store %arg6[%462, %c0_200], %461 {strides = array<i32>} : memref<64x32xf32, #tpu.memory_space<vmem>>, vector<8x32xf32>,
    %c7_i32_201 = arith.constant 7 : i32
    %c8_i32_202 = arith.constant 8 : i32
    %464 = arith.muli %c7_i32_201, %c8_i32_202 : i32
    %465 = tpu.assume_multiple %464, 8 : i32
    %c0_203 = arith.constant 0 : index
    %466 = arith.index_cast %465 : i32 to index
    %c0_204 = arith.constant 0 : index
    %467 = vector.load %arg9[%c0_203, %466, %c0_204] : memref<2x64x128xf32, #tpu.memory_space<vmem>>, vector<1x8x128xf32>
    %468 = vector.shape_cast %467 : vector<1x8x128xf32> to vector<8x128xf32>
    %c0_205 = arith.constant 0 : index
    %c0_206 = arith.constant 0 : index
    %469 = vector.load %arg3[%c0_205, %c0_206] : memref<32x128xf32, #tpu.memory_space<vmem>>, vector<32x128xf32>
    %cst_207 = arith.constant dense<0.000000e+00> : vector<8x128xf32>
    %470 = tpu.matmul %461, %469, %cst_207 {dimension_numbers = #tpu.dot_dimension_numbers<[1], [0], [0], [1], [0, 0, 1, 1], [], []>} : vector<8x32xf32>, vector<32x128xf32>, vector<8x128xf32> -> vector<8x128xf32>
    %471 = arith.addf %468, %470 : vector<8x128xf32>
    %472 = arith.mulf %471, %11 : vector<8x128xf32>
    %473 = math.tanh %472 : vector<8x128xf32>
    %cst_208 = arith.constant 1.000000e+00 : f32
    %474 = vector.broadcast %cst_208 : f32 to vector<8x128xf32>
    %475 = arith.addf %473, %474 : vector<8x128xf32>
    %cst_209 = arith.constant 5.000000e-01 : f32
    %476 = vector.broadcast %cst_209 : f32 to vector<8x128xf32>
    %477 = arith.mulf %476, %475 : vector<8x128xf32>
    %478 = arith.select %8, %473, %477 : vector<8x128xi1>, vector<8x128xf32>
    %479 = vector.extract_strided_slice %478 {offsets = [0, 0], sizes = [8, 32], strides = [1, 1]} : vector<8x128xf32> to vector<8x32xf32>
    %480 = vector.extract_strided_slice %478 {offsets = [0, 32], sizes = [8, 32], strides = [1, 1]} : vector<8x128xf32> to vector<8x32xf32>
    %481 = vector.extract_strided_slice %478 {offsets = [0, 64], sizes = [8, 32], strides = [1, 1]} : vector<8x128xf32> to vector<8x32xf32>
    %482 = vector.extract_strided_slice %478 {offsets = [0, 96], sizes = [8, 32], strides = [1, 1]} : vector<8x128xf32> to vector<8x32xf32>
    %483 = arith.mulf %480, %459 : vector<8x32xf32>
    %484 = arith.mulf %479, %481 : vector<8x32xf32>
    %485 = arith.addf %483, %484 : vector<8x32xf32>
    %486 = math.tanh %485 : vector<8x32xf32>
    %487 = arith.mulf %482, %486 : vector<8x32xf32>
    %488 = arith.index_cast %465 : i32 to index
    %c0_210 = arith.constant 0 : index
    %489 = vector.load %arg6[%488, %c0_210] : memref<64x32xf32, #tpu.memory_space<vmem>>, vector<8x32xf32>
    tpu.vector_store %arg6[%488, %c0_210], %487 {strides = array<i32>} : memref<64x32xf32, #tpu.memory_space<vmem>>, vector<8x32xf32>,
    %c8_i32_211 = arith.constant 8 : i32
    %c1_212 = arith.constant 1 : index
    %c0_213 = arith.constant 0 : index
    %c0_214 = arith.constant 0 : index
    %490 = vector.load %arg7[%c1_212, %c0_213, %c0_214] : memref<2x8x32xf32, #tpu.memory_space<vmem>>, vector<1x8x32xf32>
    %491 = vector.shape_cast %490 : vector<1x8x32xf32> to vector<8x32xf32>
    %492 = vector.shape_cast %487 : vector<8x32xf32> to vector<1x8x32xf32>
    tpu.vector_store %arg7[%c1_212, %c0_213, %c0_214], %492 {strides = array<i32>} : memref<2x8x32xf32, #tpu.memory_space<vmem>>, vector<1x8x32xf32>,
    %c1_215 = arith.constant 1 : index
    %c0_216 = arith.constant 0 : index
    %c0_217 = arith.constant 0 : index
    %493 = vector.load %arg8[%c1_215, %c0_216, %c0_217] : memref<2x8x32xf32, #tpu.memory_space<vmem>>, vector<1x8x32xf32>
    %494 = vector.shape_cast %493 : vector<1x8x32xf32> to vector<8x32xf32>
    %495 = vector.shape_cast %485 : vector<8x32xf32> to vector<1x8x32xf32>
    tpu.vector_store %arg8[%c1_215, %c0_216, %c0_217], %495 {strides = array<i32>} : memref<2x8x32xf32, #tpu.memory_space<vmem>>, vector<1x8x32xf32>,
    return
  }
  func.func @transform_0(%arg0: i32) -> (i32, i32) {
    %c0_i32 = arith.constant 0 : i32
    %c0_i32_0 = arith.constant 0 : i32
    return %arg0, %c0_i32 : i32, i32
  }
  func.func @transform_1(%arg0: i32) -> (i32, i32) {
    %c0_i32 = arith.constant 0 : i32
    %c0_i32_0 = arith.constant 0 : i32
    %c0_i32_1 = arith.constant 0 : i32
    return %c0_i32, %c0_i32_0 : i32, i32
  }
  func.func @transform_2(%arg0: i32) -> (i32, i32) {
    %c0_i32 = arith.constant 0 : i32
    %c0_i32_0 = arith.constant 0 : i32
    %c0_i32_1 = arith.constant 0 : i32
    return %c0_i32, %c0_i32_0 : i32, i32
  }
  func.func @transform_3(%arg0: i32) -> (i32, i32) {
    %c0_i32 = arith.constant 0 : i32
    %c0_i32_0 = arith.constant 0 : i32
    %c0_i32_1 = arith.constant 0 : i32
    return %c0_i32, %c0_i32_0 : i32, i32
  }
  func.func @transform_4(%arg0: i32) -> (i32, i32) {
    %c0_i32 = arith.constant 0 : i32
    %c0_i32_0 = arith.constant 0 : i32
    %c0_i32_1 = arith.constant 0 : i32
    return %c0_i32, %c0_i32_0 : i32, i32
  }
  func.func @transform_5(%arg0: i32) -> (i32, i32) {
    %c0_i32 = arith.constant 0 : i32
    %c0_i32_0 = arith.constant 0 : i32
    return %arg0, %c0_i32 : i32, i32
  }
}

</mosaic_0001>

<bundles_post_ra>
// kernel: next_char_lstm_forward.1
= control target key start
LH: loop header
LB: loop body
LE: loop exit
PB: predicated region body
PF: predicated region fallthrough
CT: control target
= control target key end

     0   :  { %vm24_vm0 = vcmask 261120   ;;  %v3077_v0 = vmov 0.0|0.0   ;;  %vm3078_vm1 = vmmov 0   ;;  %v3079_v4 = vmov 0.0   ;;  %s3081_s27 = smov 64   ;;  %s3082_s28 = smov 32   ;;  %s3549_s1 = inlined_call_operand.vmem [shape: f32[32,128], index: 1, kind: input, shape index: {}]   ;;  %s3550_s0 = inlined_call_operand.vmem [shape: f32[64,128], index: 0, kind: input, shape index: {}]   ;;  %s3551_s3 = inlined_call_operand.vmem [shape: f32[32,128], index: 3, kind: input, shape index: {}]   ;;  %s3552_s2 = inlined_call_operand.vmem [shape: f32[32,128], index: 2, kind: input, shape index: {}]   ;;  %s3553_s4 = inlined_call_operand.vmem [shape: f32[1,128], index: 4, kind: input, shape index: {}]   ;;  %s3554_s5 = inlined_call_operand.vmem [shape: f32[64,32], index: 5, kind: output, shape index: {}]  }
   0x1   :  { %2842 = vmatprep.subr.bf16.mxu0 %v3077_v0  ;;  %v38_v1 = vld [vmem:[%s3549_s1] sm:$0xff]  ;;  %v39_v2 = vld [vmem:[%s3549_s1 + $0x8] sm:$0xff]  ;;  %v40_v3 = vld [vmem:[%s3549_s1 + $0x10] sm:$0xff]  ;;  %2586 = vmatprep.mubr.msk.f32.mxu0 %vm3078_vm1, %v3079_v4  ;;  %25 = vst.msk [vmem:[#allocation2] sm:$0xff] %vm24_vm0, %v3079_v4  ;;  %v29_v9 = vlaneseq  ;;  %v3080_v13 = vmov 0.5   ;;  %s3083_s23 = smov 96  }
   0x2   :  { %26 = vst.msk [vmem:[#allocation2 + $0x8] sm:$0xff] %vm24_vm0, %v3079_v4  ;;  %27 = vst.msk [vmem:[#allocation3] sm:$0xff] %vm24_vm0, %v3079_v4  ;;  %v3134_v5 = vpack.c.bf16 %v39_v2, %v38_v1  ;;  %v41_v6 = vld [vmem:[%s3549_s1 + $0x18] sm:$0xff]  ;;  %2896 = vmatprep.subr.bf16.mxu1 %v3077_v0  ;;  %2685 = vmatprep.mubr.msk.f32.mxu1 %vm3078_vm1, %v3079_v4  ;;  %v37_v12 = vld [vmem:[%s3550_s0] sm:$0xff] }
   0x3   :  { %28 = vst.msk [vmem:[#allocation3 + $0x8] sm:$0xff] %vm24_vm0, %v3079_v4  ;;  %v3143_v7 = vpack.c.bf16 %v41_v6, %v40_v3  ;;  %v30_v10 = vand.u32 127, %v29_v9  ;;  %v143_v30 = vld [vmem:[%s3551_s3] sm:$0xff]  ;;  %v144_v31 = vld [vmem:[%s3551_s3 + $0x8] sm:$0xff]  ;;  %v145_v32 = vld [vmem:[%s3551_s3 + $0x10] sm:$0xff] }
   0x4   :  { %2844 = vmatpush3.bf16.msra.mxu0 %v3134_v5  ;;  %v3177_v33 = vpack.c.bf16 %v144_v31, %v143_v30  ;;  %v146_v34 = vld [vmem:[%s3551_s3 + $0x18] sm:$0xff]  ;;  %v2415_v42 = vld [vmem:[%s3550_s0 + $0x8] sm:$0xff]  ;;  %v2419_v62 = vld [vmem:[%s3550_s0 + $0x10] sm:$0xff] }
   0x5   :  { %2845 = vmatprep.subr.bf16.mxu0 %v3077_v0  ;;  %vm31_vm2 = vcmp.ge.s32.totalorder %v30_v10, 64  ;;  %vm32_vm3 = vcmp.lt.s32.totalorder %v30_v10, 96  ;;  %v3183_v35 = vpack.c.bf16 %v146_v34, %v145_v32 }
   0x6   :  { %vm3151_vm4 = vmand %vm31_vm2, %vm32_vm3  ;;  %2898 = vmatpush3.bf16.msra.mxu1 %v3177_v33 }
   0x7   :  { %v3160_v14 = vsel %vm3151_vm4, 1.0, %v3080_v13  ;;  %2899 = vmatprep.subr.bf16.mxu1 %v3077_v0 }
   0x8   :  { %2847 = vmatpush3.bf16.msra.mxu0 %v3143_v7  ;;  %v35_v8 = vld [vmem:[#allocation2] sm:$0xff] }
   0x9   :  { %2848 = vmatprep.subr.bf16.mxu0 %v3077_v0  ;;  %v36_v23 = vld [vmem:[#allocation3] sm:$0xff] }
   0xa   :  { %2901 = vmatpush3.bf16.msra.mxu1 %v3183_v35 }
   0xb   :  { %2587 = vmatmul.mubr.msk.f32.vlgmr.msra.gmra.mrb[0].mxu0 %vm24_vm0, %v35_v8  ;;  %2908 = vmatprep.subr.bf16.mxu1 %v3077_v0 }
   0xc   :  { %2597 = vmatprep.mubr.msk.f32.mxu0 %vm3078_vm1, %v3079_v4  ;;  %2850 = vmatpush3.bf16.msra.mxu0 %v3177_v33 }
   0xd   :  { %2851 = vmatprep.subr.bf16.mxu0 %v3077_v0 }
  0x10   :  { %2853 = vmatpush3.bf16.msra.mxu0 %v3183_v35 }
  0x11   :  { %2854 = vmatprep.subr.bf16.mxu0 %v3077_v0 }
  0xde   :  { %v112_v15 = vpop.f32.mrb[0].mxu0 }
  0xdf   :  { %v116_v16 = vadd.f32 %v112_v15, %v37_v12  ;;  %v2588_v17 = vpop.f32.mrb[1].mxu0 }
  0xe1   :  { %v117_v18 = vmul.f32 %v116_v16, %v3160_v14 }
  0xe3   :  { %3013 = vtanh.f32 %v117_v18 }
  0xed   :  { %v3014_v19 = vpop.eup %3013 }
  0xee   :  { %v119_v20 = vadd.f32 1.0, %v3014_v19 }
  0xf0   :  { %v120_v21 = vmul.f32 0.5, %v119_v20 }
  0xf2   :  { %v121_v22 = vsel %vm3151_vm4, %v3014_v19, %v120_v21 }
  0xf3   :  { %128 = vrot.lane.b32.xlu0 %v121_v22, %s3081_s27 }
  0xf7   :  { %123 = vrot.lane.b32.xlu0 %v36_v23, %s3082_s28 }
 0x165   :  { %v129_v24 = vpop.permute.xlu0 %128 }
 0x166   :  { %v131_v25 = vmul.f32 %v129_v24, %v121_v22  ;;  %v2423_v24 = vld [vmem:[%s3550_s0 + $0x18] sm:$0xff] }
 0x168   :  { %133 = vrot.lane.b32.xlu1 %v131_v25, %s3082_s28 }
 0x169   :  { %v124_v26 = vpop.permute.xlu0 %123 }
 0x16a   :  { %v126_v27 = vmul.f32 %v124_v26, %v121_v22 }
 0x1da   :  { %v134_v28 = vpop.permute.xlu1 %133 }
 0x1db   :  { %v136_v29 = vadd.f32 %v134_v28, %v126_v27 }
 0x1dd   :  { %3015 = vtanh.f32 %v136_v29 }
 0x1e7   :  { %v3016_v36 = vpop.eup %3015 }
 0x1e8   :  { %139 = vrot.lane.b32.xlu1 %v3016_v36, %s3081_s27 }
 0x25a   :  { %v140_v37 = vpop.permute.xlu1 %139 }
 0x25b   :  { %v142_v38 = vmul.f32 %v140_v37, %v121_v22 }
 0x25d   :  { %155 = vrot.lane.b32.xlu0 %v142_v38, %s3082_s28 }
 0x2cf   :  { %v156_v39 = vpop.permute.xlu0 %155 }
 0x2d0   :  { %2598 = vmatmul.mubr.msk.f32.vlgmr.msra.gmra.mrb[2].mxu0 %vm24_vm0, %v156_v39 }
 0x2d1   :  { %2856 = vmatpush3.bf16.msra.mxu0 %v3134_v5  ;;  %2608 = vmatprep.mubr.msk.f32.mxu0 %vm3078_vm1, %v3079_v4 }
 0x2d2   :  { %2857 = vmatprep.subr.bf16.mxu0 %v3077_v0 }
 0x2d5   :  { %2859 = vmatpush3.bf16.msra.mxu0 %v3143_v7 }
 0x2d6   :  { %2860 = vmatprep.subr.bf16.mxu0 %v3077_v0 }
 0x2d8   :  { %2609 = vmatmul.mubr.msk.f32.vlgmr.msra.gmra.mrb[4].mxu0 %vm24_vm0, %v156_v39 }
 0x2d9   :  { %2862 = vmatpush3.bf16.msra.mxu0 %v3177_v33  ;;  %2619 = vmatprep.mubr.msk.f32.mxu0 %vm3078_vm1, %v3079_v4 }
 0x2da   :  { %2863 = vmatprep.subr.bf16.mxu0 %v3077_v0 }
 0x2dd   :  { %2865 = vmatpush3.bf16.msra.mxu0 %v3183_v35 }
 0x2de   :  { %2866 = vmatprep.subr.bf16.mxu0 %v3077_v0 }
 0x3a3   :  { %v3208_v40 = vpop.f32.mrb[2].mxu0 }
 0x3a4   :  { %v2599_v41 = vpop.f32.mrb[3].mxu0 }
 0x3ab   :  { %v302_v43 = vpop.f32.mrb[4].mxu0 }
 0x3ac   :  { %v306_v44 = vadd.f32 %v2415_v42, %v302_v43  ;;  %v2610_v45 = vpop.f32.mrb[5].mxu0 }
 0x3ae   :  { %v307_v46 = vmul.f32 %v306_v44, %v3160_v14 }
 0x3b0   :  { %3017 = vtanh.f32 %v307_v46 }
 0x3ba   :  { %v3018_v47 = vpop.eup %3017 }
 0x3bb   :  { %v309_v48 = vadd.f32 1.0, %v3018_v47 }
 0x3bd   :  { %v310_v49 = vmul.f32 0.5, %v309_v48 }
 0x3bf   :  { %v311_v50 = vsel %vm3151_vm4, %v3018_v47, %v310_v49  ;;  %v2427_v47 = vld [vmem:[%s3550_s0 + $0x20] sm:$0xff] }
 0x3c0   :  { %314 = vrot.lane.b32.xlu1 %v311_v50, %s3081_s27  ;;  %v312_v53 = vmul.f32 %v311_v50, %v136_v29 }
 0x432   :  { %v315_v51 = vpop.permute.xlu1 %314 }
 0x433   :  { %v317_v52 = vmul.f32 %v315_v51, %v311_v50 }
 0x435   :  { %319 = vrot.lane.b32.xlu0 %v317_v52, %s3082_s28 }
 0x4a7   :  { %v320_v54 = vpop.permute.xlu0 %319 }
 0x4a8   :  { %v322_v55 = vadd.f32 %v320_v54, %v312_v53 }
 0x4aa   :  { %3019 = vtanh.f32 %v322_v55 }
 0x4b4   :  { %v3020_v56 = vpop.eup %3019 }
 0x4b5   :  { %325 = vrot.lane.b32.xlu1 %v3020_v56, %s3081_s27 }
 0x527   :  { %v326_v57 = vpop.permute.xlu1 %325 }
 0x528   :  { %v328_v58 = vmul.f32 %v326_v57, %v311_v50 }
 0x52a   :  { %341 = vrot.lane.b32.xlu0 %v328_v58, %s3082_s28 }
 0x59c   :  { %v342_v59 = vpop.permute.xlu0 %341 }
 0x59d   :  { %2620 = vmatmul.mubr.msk.f32.vlgmr.msra.gmra.mrb[6].mxu0 %vm24_vm0, %v342_v59 }
 0x59e   :  { %2868 = vmatpush3.bf16.msra.mxu0 %v3134_v5  ;;  %2630 = vmatprep.mubr.msk.f32.mxu0 %vm3078_vm1, %v3079_v4 }
 0x59f   :  { %2869 = vmatprep.subr.bf16.mxu0 %v3077_v0 }
 0x5a2   :  { %2871 = vmatpush3.bf16.msra.mxu0 %v3143_v7 }
 0x5a3   :  { %2872 = vmatprep.subr.bf16.mxu0 %v3077_v0 }
 0x5a5   :  { %2631 = vmatmul.mubr.msk.f32.vlgmr.msra.gmra.mrb[8].mxu0 %vm24_vm0, %v342_v59 }
 0x5a6   :  { %2874 = vmatpush3.bf16.msra.mxu0 %v3177_v33  ;;  %2641 = vmatprep.mubr.msk.f32.mxu0 %vm3078_vm1, %v3079_v4 }
 0x5a7   :  { %2875 = vmatprep.subr.bf16.mxu0 %v3077_v0 }
 0x5aa   :  { %2877 = vmatpush3.bf16.msra.mxu0 %v3183_v35 }
 0x5ab   :  { %2878 = vmatprep.subr.bf16.mxu0 %v3077_v0 }
 0x670   :  { %v3234_v60 = vpop.f32.mrb[6].mxu0 }
 0x671   :  { %v2621_v61 = vpop.f32.mrb[7].mxu0 }
 0x678   :  { %v489_v63 = vpop.f32.mrb[8].mxu0 }
 0x679   :  { %v493_v1 = vadd.f32 %v2419_v62, %v489_v63  ;;  %v2632_v2 = vpop.f32.mrb[9].mxu0 }
 0x67b   :  { %v494_v3 = vmul.f32 %v493_v1, %v3160_v14 }
 0x67d   :  { %3021 = vtanh.f32 %v494_v3  ;;  %v2431_v3 = vld [vmem:[%s3550_s0 + $0x28] sm:$0xff] }
 0x687   :  { %v3022_v6 = vpop.eup %3021 }
 0x688   :  { %v496_v8 = vadd.f32 1.0, %v3022_v6 }
 0x68a   :  { %v497_v9 = vmul.f32 0.5, %v496_v8 }
 0x68c   :  { %v498_v10 = vsel %vm3151_vm4, %v3022_v6, %v497_v9 }
 0x68d   :  { %501 = vrot.lane.b32.xlu1 %v498_v10, %s3081_s27  ;;  %v499_v15 = vmul.f32 %v498_v10, %v322_v55 }
 0x6ff   :  { %v502_v12 = vpop.permute.xlu1 %501 }
 0x700   :  { %v504_v13 = vmul.f32 %v502_v12, %v498_v10 }
 0x702   :  { %506 = vrot.lane.b32.xlu0 %v504_v13, %s3082_s28 }
 0x774   :  { %v507_v16 = vpop.permute.xlu0 %506 }
 0x775   :  { %v509_v17 = vadd.f32 %v507_v16, %v499_v15 }
 0x777   :  { %3023 = vtanh.f32 %v509_v17 }
 0x781   :  { %v3024_v18 = vpop.eup %3023 }
 0x782   :  { %512 = vrot.lane.b32.xlu1 %v3024_v18, %s3081_s27 }
 0x7f4   :  { %v513_v19 = vpop.permute.xlu1 %512 }
 0x7f5   :  { %v515_v20 = vmul.f32 %v513_v19, %v498_v10 }
 0x7f7   :  { %528 = vrot.lane.b32.xlu0 %v515_v20, %s3082_s28 }
 0x869   :  { %v529_v21 = vpop.permute.xlu0 %528 }
 0x86a   :  { %2642 = vmatmul.mubr.msk.f32.vlgmr.msra.gmra.mrb[10].mxu0 %vm24_vm0, %v529_v21 }
 0x86b   :  { %2880 = vmatpush3.bf16.msra.mxu0 %v3134_v5  ;;  %2652 = vmatprep.mubr.msk.f32.mxu0 %vm3078_vm1, %v3079_v4 }
 0x86c   :  { %2881 = vmatprep.subr.bf16.mxu0 %v3077_v0 }
 0x86f   :  { %2883 = vmatpush3.bf16.msra.mxu0 %v3143_v7 }
 0x870   :  { %2884 = vmatprep.subr.bf16.mxu0 %v3077_v0 }
 0x872   :  { %2653 = vmatmul.mubr.msk.f32.vlgmr.msra.gmra.mrb[12].mxu0 %vm24_vm0, %v529_v21 }
 0x873   :  { %2886 = vmatpush3.bf16.msra.mxu0 %v3177_v33  ;;  %2663 = vmatprep.mubr.msk.f32.mxu0 %vm3078_vm1, %v3079_v4 }
 0x874   :  { %2887 = vmatprep.subr.bf16.mxu0 %v3077_v0 }
 0x877   :  { %2889 = vmatpush3.bf16.msra.mxu0 %v3183_v35 }
 0x878   :  { %2890 = vmatprep.subr.bf16.mxu0 %v3077_v0 }
 0x93d   :  { %v3260_v22 = vpop.f32.mrb[10].mxu0 }
 0x93e   :  { %v2643_v23 = vpop.f32.mrb[11].mxu0 }
 0x945   :  { %v676_v25 = vpop.f32.mrb[12].mxu0 }
 0x946   :  { %v680_v26 = vadd.f32 %v2423_v24, %v676_v25  ;;  %v2654_v27 = vpop.f32.mrb[13].mxu0 }
 0x948   :  { %v681_v28 = vmul.f32 %v680_v26, %v3160_v14 }
 0x94a   :  { %3025 = vtanh.f32 %v681_v28 }
 0x954   :  { %v3026_v29 = vpop.eup %3025 }
 0x955   :  { %v683_v30 = vadd.f32 1.0, %v3026_v29 }
 0x957   :  { %v684_v31 = vmul.f32 0.5, %v683_v30 }
 0x959   :  { %v685_v32 = vsel %vm3151_vm4, %v3026_v29, %v684_v31 }
 0x95a   :  { %688 = vrot.lane.b32.xlu1 %v685_v32, %s3081_s27  ;;  %v686_v37 = vmul.f32 %v685_v32, %v509_v17 }
 0x9cc   :  { %v689_v34 = vpop.permute.xlu1 %688 }
 0x9cd   :  { %v691_v36 = vmul.f32 %v689_v34, %v685_v32 }
 0x9cf   :  { %693 = vrot.lane.b32.xlu0 %v691_v36, %s3082_s28 }
 0xa41   :  { %v694_v38 = vpop.permute.xlu0 %693 }
 0xa42   :  { %v696_v39 = vadd.f32 %v694_v38, %v686_v37 }
 0xa44   :  { %3027 = vtanh.f32 %v696_v39 }
 0xa4e   :  { %v3028_v41 = vpop.eup %3027 }
 0xa4f   :  { %699 = vrot.lane.b32.xlu1 %v3028_v41, %s3081_s27 }
 0xac1   :  { %v700_v42 = vpop.permute.xlu1 %699 }
 0xac2   :  { %v702_v43 = vmul.f32 %v700_v42, %v685_v32 }
 0xac4   :  { %715 = vrot.lane.b32.xlu0 %v702_v43, %s3082_s28 }
 0xb36   :  { %v716_v44 = vpop.permute.xlu0 %715 }
 0xb37   :  { %2664 = vmatmul.mubr.msk.f32.vlgmr.msra.gmra.mrb[14].mxu0 %vm24_vm0, %v716_v44 }
 0xb38   :  { %2892 = vmatpush3.bf16.msra.mxu0 %v3134_v5  ;;  %2674 = vmatprep.mubr.msk.f32.mxu0 %vm3078_vm1, %v3079_v4 }
 0xb39   :  { %2893 = vmatprep.subr.bf16.mxu0 %v3077_v0 }
 0xb3c   :  { %2895 = vmatpush3.bf16.msra.mxu0 %v3143_v7 }
 0xb3d   :  { %2902 = vmatprep.subr.bf16.mxu0 %v3077_v0 }
 0xb3f   :  { %2675 = vmatmul.mubr.msk.f32.vlgmr.msra.gmra.mrb[16].mxu0 %vm24_vm0, %v716_v44 }
 0xb40   :  { %2904 = vmatpush3.bf16.msra.mxu0 %v3134_v5  ;;  %2696 = vmatprep.mubr.msk.f32.mxu0 %vm3078_vm1, %v3079_v4 }
 0xb41   :  { %2905 = vmatprep.subr.bf16.mxu0 %v3077_v0 }
 0xb44   :  { %2907 = vmatpush3.bf16.msra.mxu0 %v3143_v7 }
 0xb45   :  { %2914 = vmatprep.subr.bf16.mxu0 %v3077_v0 }
 0xc0a   :  { %v3286_v45 = vpop.f32.mrb[14].mxu0 }
 0xc0b   :  { %v2665_v46 = vpop.f32.mrb[15].mxu0 }
 0xc12   :  { %v863_v48 = vpop.f32.mrb[16].mxu0 }
 0xc13   :  { %v867_v49 = vadd.f32 %v2427_v47, %v863_v48  ;;  %v2676_v50 = vpop.f32.mrb[17].mxu0  ;;  %v2439_v47 = vld [vmem:[%s3550_s0 + $0x38] sm:$0xff] }
 0xc15   :  { %v868_v51 = vmul.f32 %v867_v49, %v3160_v14 }
 0xc17   :  { %3029 = vtanh.f32 %v868_v51 }
 0xc21   :  { %v3030_v52 = vpop.eup %3029 }
 0xc22   :  { %v870_v53 = vadd.f32 1.0, %v3030_v52 }
 0xc24   :  { %v871_v54 = vmul.f32 0.5, %v870_v53 }
 0xc26   :  { %v872_v55 = vsel %vm3151_vm4, %v3030_v52, %v871_v54 }
 0xc27   :  { %875 = vrot.lane.b32.xlu1 %v872_v55, %s3081_s27  ;;  %v873_v58 = vmul.f32 %v872_v55, %v696_v39 }
 0xc99   :  { %v876_v56 = vpop.permute.xlu1 %875 }
 0xc9a   :  { %v878_v57 = vmul.f32 %v876_v56, %v872_v55 }
 0xc9c   :  { %880 = vrot.lane.b32.xlu0 %v878_v57, %s3082_s28 }
 0xd0e   :  { %v881_v59 = vpop.permute.xlu0 %880 }
 0xd0f   :  { %v883_v61 = vadd.f32 %v881_v59, %v873_v58 }
 0xd11   :  { %3031 = vtanh.f32 %v883_v61 }
 0xd1b   :  { %v3032_v62 = vpop.eup %3031 }
 0xd1c   :  { %886 = vrot.lane.b32.xlu1 %v3032_v62, %s3081_s27 }
 0xd8e   :  { %v887_v63 = vpop.permute.xlu1 %886 }
 0xd8f   :  { %v889_v1 = vmul.f32 %v887_v63, %v872_v55  ;;  %v1549_v63 = vld [vmem:[#allocation3 + $0x8] sm:$0xff] }
 0xd91   :  { %902 = vrot.lane.b32.xlu0 %v889_v1, %s3082_s28  ;;  %v1551_v1 = vld [vmem:[%s3552_s2] sm:$0xff] }
 0xe03   :  { %v903_v2 = vpop.permute.xlu0 %902 }
 0xe04   :  { %2686 = vmatmul.mubr.msk.f32.vlgmr.msra.gmra.mrb[0].mxu1 %vm24_vm0, %v903_v2  ;;  %2697 = vmatmul.mubr.msk.f32.vlgmr.msra.gmra.mrb[18].mxu0 %vm24_vm0, %v903_v2  ;;  %v1552_v2 = vld [vmem:[%s3552_s2 + $0x8] sm:$0xff] }
 0xe05   :  { %2910 = vmatpush3.bf16.msra.mxu1 %v3177_v33  ;;  %2916 = vmatpush3.bf16.msra.mxu0 %v3134_v5 }
 0xe06   :  { %2911 = vmatprep.subr.bf16.mxu1 %v3077_v0  ;;  %2917 = vmatprep.subr.bf16.mxu0 %v3077_v0 }
 0xe07   :  { %2707 = vmatprep.mubr.msk.f32.mxu1 %vm3078_vm1, %v3079_v4  ;;  %2718 = vmatprep.mubr.msk.f32.mxu0 %vm3078_vm1, %v3079_v4 }
 0xe09   :  { %2913 = vmatpush3.bf16.msra.mxu1 %v3183_v35  ;;  %2919 = vmatpush3.bf16.msra.mxu0 %v3143_v7 }
 0xe0a   :  { %2920 = vmatprep.subr.bf16.mxu1 %v3077_v0  ;;  %2926 = vmatprep.subr.bf16.mxu0 %v3077_v0 }
 0xed7   :  { %v1050_v6 = vpop.f32.mrb[18].mxu0 }
 0xed8   :  { %v1054_v8 = vadd.f32 %v2431_v3, %v1050_v6  ;;  %v2698_v9 = vpop.f32.mrb[19].mxu0  ;;  %v3373_v3 = vpack.c.bf16 %v1552_v2, %v1551_v1  ;;  %v1553_v6 = vld [vmem:[%s3552_s2 + $0x10] sm:$0xff] }
 0xeda   :  { %v1055_v10 = vmul.f32 %v1054_v8, %v3160_v14  ;;  %v1554_v8 = vld [vmem:[%s3552_s2 + $0x18] sm:$0xff] }
 0xedc   :  { %3033 = vtanh.f32 %v1055_v10  ;;  %v3384_v10 = vpack.c.bf16 %v1554_v8, %v1553_v6 }
 0xee6   :  { %v3034_v12 = vpop.eup %3033 }
 0xee7   :  { %v1057_v13 = vadd.f32 1.0, %v3034_v12 }
 0xee9   :  { %v1058_v15 = vmul.f32 0.5, %v1057_v13  ;;  %v3401_v13 = vld [vmem:[%s3553_s4] ss:$0 sm:$0xff] }
 0xeeb   :  { %v1059_v16 = vsel %vm3151_vm4, %v3034_v12, %v1058_v15  ;;  %v1547_v12 = vld [vmem:[#allocation2 + $0x8] sm:$0xff]  ;;  %v226_v15 = vadd.f32 %v3401_v13, %v3208_v40 }
 0xeec   :  { %1062 = vrot.lane.b32.xlu1 %v1059_v16, %s3081_s27  ;;  %v1060_v19 = vmul.f32 %v1059_v16, %v883_v61 }
 0xf5e   :  { %v1063_v17 = vpop.permute.xlu1 %1062 }
 0xf5f   :  { %v1065_v18 = vmul.f32 %v1063_v17, %v1059_v16 }
 0xf61   :  { %1067 = vrot.lane.b32.xlu0 %v1065_v18, %s3082_s28 }
 0xfd3   :  { %v1068_v20 = vpop.permute.xlu0 %1067 }
 0xfd4   :  { %v1070_v21 = vadd.f32 %v1068_v20, %v1060_v19 }
 0xfd6   :  { %3035 = vtanh.f32 %v1070_v21 }
 0xfe0   :  { %v3036_v23 = vpop.eup %3035 }
 0xfe1   :  { %1073 = vrot.lane.b32.xlu1 %v3036_v23, %s3081_s27 }
0x1053   :  { %v1074_v24 = vpop.permute.xlu1 %1073 }
0x1054   :  { %v1076_v25 = vmul.f32 %v1074_v24, %v1059_v16 }
0x1056   :  { %1089 = vrot.lane.b32.xlu0 %v1076_v25, %s3082_s28 }
0x10c8   :  { %v1090_v26 = vpop.permute.xlu0 %1089 }
0x10c9   :  { %2708 = vmatmul.mubr.msk.f32.vlgmr.msra.gmra.mrb[2].mxu1 %vm24_vm0, %v1090_v26  ;;  %2719 = vmatmul.mubr.msk.f32.vlgmr.msra.gmra.mrb[20].mxu0 %vm24_vm0, %v1090_v26 }
0x10ca   :  { %2922 = vmatpush3.bf16.msra.mxu1 %v3177_v33  ;;  %2928 = vmatpush3.bf16.msra.mxu0 %v3134_v5  ;;  %v2435_v5 = vld [vmem:[%s3550_s0 + $0x30] sm:$0xff] }
0x10cb   :  { %2923 = vmatprep.subr.bf16.mxu1 %v3077_v0  ;;  %2929 = vmatprep.subr.bf16.mxu0 %v3077_v0 }
0x10cc   :  { %2729 = vmatprep.mubr.msk.f32.mxu1 %vm3078_vm1, %v3079_v4  ;;  %2740 = vmatprep.mubr.msk.f32.mxu0 %vm3078_vm1, %v3079_v4 }
0x10ce   :  { %2925 = vmatpush3.bf16.msra.mxu1 %v3183_v35  ;;  %2931 = vmatpush3.bf16.msra.mxu0 %v3143_v7 }
0x10cf   :  { %2932 = vmatprep.subr.bf16.mxu1 %v3077_v0 }
0x119c   :  { %v1237_v27 = vpop.f32.mrb[20].mxu0 }
0x119d   :  { %v1241_v28 = vadd.f32 %v2435_v5, %v1237_v27  ;;  %v2720_v29 = vpop.f32.mrb[21].mxu0 }
0x119f   :  { %v1242_v30 = vmul.f32 %v1241_v28, %v3160_v14 }
0x11a1   :  { %3037 = vtanh.f32 %v1242_v30 }
0x11ab   :  { %v3038_v31 = vpop.eup %3037 }
0x11ac   :  { %v1244_v32 = vadd.f32 1.0, %v3038_v31 }
0x11ae   :  { %v1245_v34 = vmul.f32 0.5, %v1244_v32 }
0x11b0   :  { %v1246_v36 = vsel %vm3151_vm4, %v3038_v31, %v1245_v34  ;;  %v412_v34 = vadd.f32 %v3401_v13, %v3234_v60 }
0x11b1   :  { %1249 = vrot.lane.b32.xlu1 %v1246_v36, %s3081_s27  ;;  %v1247_v38 = vmul.f32 %v1246_v36, %v1070_v21 }
0x1223   :  { %v1250_v7 = vpop.permute.xlu1 %1249 }
0x1224   :  { %v1252_v37 = vmul.f32 %v1250_v7, %v1246_v36 }
0x1226   :  { %1254 = vrot.lane.b32.xlu0 %v1252_v37, %s3082_s28 }
0x1298   :  { %v1255_v39 = vpop.permute.xlu0 %1254 }
0x1299   :  { %v1257_v41 = vadd.f32 %v1255_v39, %v1247_v38 }
0x129b   :  { %3039 = vtanh.f32 %v1257_v41 }
0x12a5   :  { %v3040_v42 = vpop.eup %3039 }
0x12a6   :  { %1260 = vrot.lane.b32.xlu1 %v3040_v42, %s3081_s27 }
0x1318   :  { %v1261_v43 = vpop.permute.xlu1 %1260 }
0x1319   :  { %v1263_v44 = vmul.f32 %v1261_v43, %v1246_v36 }
0x131b   :  { %1276 = vrot.lane.b32.xlu0 %v1263_v44, %s3082_s28 }
0x138d   :  { %v1277_v46 = vpop.permute.xlu0 %1276 }
0x138e   :  { %2730 = vmatmul.mubr.msk.f32.vlgmr.msra.gmra.mrb[4].mxu1 %vm24_vm0, %v1277_v46  ;;  %2741 = vmatmul.mubr.msk.f32.vlgmr.msra.gmra.mrb[22].mxu0 %vm24_vm0, %v1277_v46 }
0x138f   :  { %2934 = vmatpush3.bf16.msra.mxu1 %v3177_v33  ;;  %2751 = vmatprep.mubr.msk.f32.mxu1 %vm3078_vm1, %v3079_v4 }
0x1390   :  { %2935 = vmatprep.subr.bf16.mxu1 %v3077_v0 }
0x1393   :  { %2937 = vmatpush3.bf16.msra.mxu1 %v3183_v35 }
0x1394   :  { %2938 = vmatprep.subr.bf16.mxu1 %v3077_v0 }
0x1461   :  { %v1424_v48 = vpop.f32.mrb[22].mxu0 }
0x1462   :  { %v1428_v49 = vadd.f32 %v2439_v47, %v1424_v48  ;;  %v2742_v50 = vpop.f32.mrb[23].mxu0 }
0x1464   :  { %v1429_v51 = vmul.f32 %v1428_v49, %v3160_v14 }
0x1466   :  { %3041 = vtanh.f32 %v1429_v51 }
0x1470   :  { %v3042_v33 = vpop.eup %3041 }
0x1471   :  { %v1431_v52 = vadd.f32 1.0, %v3042_v33 }
0x1473   :  { %v1432_v53 = vmul.f32 0.5, %v1431_v52  ;;  %v599_v52 = vadd.f32 %v3401_v13, %v3260_v22 }
0x1475   :  { %v1433_v54 = vsel %vm3151_vm4, %v3042_v33, %v1432_v53 }
0x1476   :  { %1436 = vrot.lane.b32.xlu1 %v1433_v54, %s3081_s27  ;;  %v1434_v56 = vmul.f32 %v1433_v54, %v1257_v41 }
0x14e8   :  { %v1437_v35 = vpop.permute.xlu1 %1436 }
0x14e9   :  { %v1439_v55 = vmul.f32 %v1437_v35, %v1433_v54 }
0x14eb   :  { %1441 = vrot.lane.b32.xlu0 %v1439_v55, %s3082_s28 }
0x155d   :  { %v1442_v57 = vpop.permute.xlu0 %1441 }
0x155e   :  { %v3361_v58 = vadd.f32 %v1442_v57, %v1434_v56 }
0x1560   :  { %3043 = vtanh.f32 %v3361_v58 }
0x156a   :  { %v3044_v59 = vpop.eup %3043 }
0x156b   :  { %1447 = vrot.lane.b32.xlu1 %v3044_v59, %s3081_s27 }
0x15dd   :  { %v1448_v61 = vpop.permute.xlu1 %1447 }
0x15de   :  { %v1450_v62 = vmul.f32 %v1448_v61, %v1433_v54 }
0x15e0   :  { %1463 = vrot.lane.b32.xlu0 %v1450_v62, %s3082_s28 }
0x15e4   :  { %1635 = vrot.lane.b32.xlu0 %v1549_v63, %s3082_s28 }
0x1652   :  { %v1464_v9 = vpop.permute.xlu0 %1463 }
0x1653   :  { %1540 = vst.msk [vmem:[#allocation2] sm:$0xff] %vm24_vm0, %v1464_v9  ;;  %2752 = vmatmul.mubr.msk.f32.vlgmr.msra.gmra.mrb[6].mxu1 %vm24_vm0, %v1464_v9 }
0x1654   :  { %2940 = vmatpush3.bf16.msra.mxu1 %v3373_v3  ;;  %2762 = vmatprep.mubr.msk.f32.mxu1 %vm3078_vm1, %v3079_v4 }
0x1655   :  { %2941 = vmatprep.subr.bf16.mxu1 %v3077_v0 }
0x1656   :  { %v1636_v5 = vpop.permute.xlu0 %1635 }
0x1658   :  { %2943 = vmatpush3.bf16.msra.mxu1 %v3384_v10 }
0x1659   :  { %2944 = vmatprep.subr.bf16.mxu1 %v3077_v0 }
0x165b   :  { %2763 = vmatmul.mubr.msk.f32.vlgmr.msra.gmra.mrb[8].mxu1 %vm24_vm0, %v1547_v12 }
0x165c   :  { %2946 = vmatpush3.bf16.msra.mxu1 %v3373_v3  ;;  %2773 = vmatprep.mubr.msk.f32.mxu1 %vm3078_vm1, %v3079_v4 }
0x165d   :  { %2947 = vmatprep.subr.bf16.mxu1 %v3077_v0 }
0x1660   :  { %2949 = vmatpush3.bf16.msra.mxu1 %v3384_v10 }
0x1661   :  { %2950 = vmatprep.subr.bf16.mxu1 %v3077_v0 }
0x172e   :  { %v1624_v16 = vpop.f32.mrb[8].mxu1 }
0x172f   :  { %v1628_v17 = vadd.f32 %v1624_v16, %v226_v15  ;;  %v2764_v18 = vpop.f32.mrb[9].mxu1  ;;  %v786_v15 = vadd.f32 %v3401_v13, %v3286_v45 }
0x1731   :  { %v1629_v19 = vmul.f32 %v1628_v17, %v3160_v14 }
0x1733   :  { %3045 = vtanh.f32 %v1629_v19 }
0x173d   :  { %v3046_v20 = vpop.eup %3045 }
0x173e   :  { %v1631_v21 = vadd.f32 1.0, %v3046_v20 }
0x1740   :  { %v1632_v23 = vmul.f32 0.5, %v1631_v21 }
0x1742   :  { %v1633_v24 = vsel %vm3151_vm4, %v3046_v20, %v1632_v23 }
0x1743   :  { %1640 = vrot.lane.b32.xlu1 %v1633_v24, %s3081_s27  ;;  %v1638_v40 = vmul.f32 %v1636_v5, %v1633_v24 }
0x17b5   :  { %v1641_v25 = vpop.permute.xlu1 %1640 }
0x17b6   :  { %v1643_v26 = vmul.f32 %v1641_v25, %v1633_v24 }
0x17b8   :  { %1645 = vrot.lane.b32.xlu1 %v1643_v26, %s3082_s28 }
0x182a   :  { %v1646_v27 = vpop.permute.xlu1 %1645 }
0x182b   :  { %v1648_v28 = vadd.f32 %v1646_v27, %v1638_v40 }
0x182d   :  { %3047 = vtanh.f32 %v1648_v28 }
0x1837   :  { %v3048_v29 = vpop.eup %3047 }
0x1838   :  { %1651 = vrot.lane.b32.xlu0 %v3048_v29, %s3081_s27 }
0x18aa   :  { %v1652_v30 = vpop.permute.xlu0 %1651 }
0x18ab   :  { %v1654_v31 = vmul.f32 %v1652_v30, %v1633_v24 }
0x18ad   :  { %1656 = vrot.lane.b32.xlu1 %v1654_v31, %s3082_s28 }
0x191f   :  { %v1657_v32 = vpop.permute.xlu1 %1656 }
0x1920   :  { %1659 = vst.msk [vmem:[%s3554_s5] sm:$0xff] %vm24_vm0, %v1657_v32  ;;  %2774 = vmatmul.mubr.msk.f32.vlgmr.msra.gmra.mrb[10].mxu1 %vm24_vm0, %v1657_v32 }
0x1921   :  { %2952 = vmatpush3.bf16.msra.mxu1 %v3373_v3  ;;  %2784 = vmatprep.mubr.msk.f32.mxu1 %vm3078_vm1, %v3079_v4 }
0x1922   :  { %2953 = vmatprep.subr.bf16.mxu1 %v3077_v0 }
0x1925   :  { %2955 = vmatpush3.bf16.msra.mxu1 %v3384_v10 }
0x1926   :  { %2956 = vmatprep.subr.bf16.mxu1 %v3077_v0 }
0x19f3   :  { %v1733_v36 = vpop.f32.mrb[10].mxu1 }
0x19f4   :  { %v1737_v7 = vadd.f32 %v1733_v36, %v412_v34  ;;  %v2775_v37 = vpop.f32.mrb[11].mxu1 }
0x19f6   :  { %v1738_v38 = vmul.f32 %v1737_v7, %v3160_v14 }
0x19f8   :  { %3049 = vtanh.f32 %v1738_v38 }
0x1a02   :  { %v3050_v39 = vpop.eup %3049 }
0x1a03   :  { %v1740_v41 = vadd.f32 1.0, %v3050_v39 }
0x1a05   :  { %v1741_v42 = vmul.f32 0.5, %v1740_v41 }
0x1a07   :  { %v1742_v43 = vsel %vm3151_vm4, %v3050_v39, %v1741_v42 }
0x1a08   :  { %1745 = vrot.lane.b32.xlu0 %v1742_v43, %s3081_s27  ;;  %v1743_v47 = vmul.f32 %v1742_v43, %v1648_v28 }
0x1a7a   :  { %v1746_v44 = vpop.permute.xlu0 %1745 }
0x1a7b   :  { %v1748_v46 = vmul.f32 %v1746_v44, %v1742_v43 }
0x1a7d   :  { %1750 = vrot.lane.b32.xlu1 %v1748_v46, %s3082_s28 }
0x1aef   :  { %v1751_v60 = vpop.permute.xlu1 %1750 }
0x1af0   :  { %v1753_v48 = vadd.f32 %v1751_v60, %v1743_v47 }
0x1af2   :  { %3051 = vtanh.f32 %v1753_v48 }
0x1afc   :  { %v3052_v49 = vpop.eup %3051 }
0x1afd   :  { %1756 = vrot.lane.b32.xlu0 %v3052_v49, %s3081_s27  ;;  %v2433_v49 = vld [vmem:[%s3553_s4] ss:$0 sm:$0xff] }
0x1b6f   :  { %v1757_v50 = vpop.permute.xlu0 %1756 }
0x1b70   :  { %v1759_v51 = vmul.f32 %v1757_v50, %v1742_v43 }
0x1b72   :  { %1761 = vrot.lane.b32.xlu1 %v1759_v51, %s3082_s28 }
0x1be4   :  { %v1762_v33 = vpop.permute.xlu1 %1761 }
0x1be5   :  { %2445 = vst.msk [vmem:[%s3554_s5 + $0x8] sm:$0xff] %vm24_vm0, %v1762_v33  ;;  %2785 = vmatmul.mubr.msk.f32.vlgmr.msra.gmra.mrb[12].mxu1 %vm24_vm0, %v1762_v33 }
0x1be6   :  { %2958 = vmatpush3.bf16.msra.mxu1 %v3373_v3  ;;  %2795 = vmatprep.mubr.msk.f32.mxu1 %vm3078_vm1, %v3079_v4 }
0x1be7   :  { %2959 = vmatprep.subr.bf16.mxu1 %v3077_v0 }
0x1bea   :  { %2961 = vmatpush3.bf16.msra.mxu1 %v3384_v10 }
0x1beb   :  { %2962 = vmatprep.subr.bf16.mxu1 %v3077_v0 }
0x1cb8   :  { %v1839_v53 = vpop.f32.mrb[12].mxu1 }
0x1cb9   :  { %v1843_v54 = vadd.f32 %v1839_v53, %v599_v52  ;;  %v2786_v35 = vpop.f32.mrb[13].mxu1 }
0x1cbb   :  { %v1844_v55 = vmul.f32 %v1843_v54, %v3160_v14 }
0x1cbd   :  { %3053 = vtanh.f32 %v1844_v55 }
0x1cc7   :  { %v3054_v56 = vpop.eup %3053 }
0x1cc8   :  { %v1846_v57 = vadd.f32 1.0, %v3054_v56 }
0x1cca   :  { %v1847_v59 = vmul.f32 0.5, %v1846_v57 }
0x1ccc   :  { %v1848_v61 = vsel %vm3151_vm4, %v3054_v56, %v1847_v59 }
0x1ccd   :  { %1851 = vrot.lane.b32.xlu0 %v1848_v61, %s3081_s27  ;;  %v1849_v1 = vmul.f32 %v1848_v61, %v1753_v48 }
0x1d3f   :  { %v1852_v62 = vpop.permute.xlu0 %1851 }
0x1d40   :  { %v1854_v63 = vmul.f32 %v1852_v62, %v1848_v61 }
0x1d42   :  { %1856 = vrot.lane.b32.xlu1 %v1854_v63, %s3082_s28 }
0x1db4   :  { %v1857_v22 = vpop.permute.xlu1 %1856 }
0x1db5   :  { %v1859_v2 = vadd.f32 %v1857_v22, %v1849_v1 }
0x1db7   :  { %3055 = vtanh.f32 %v1859_v2 }
0x1dc1   :  { %v3056_v6 = vpop.eup %3055 }
0x1dc2   :  { %1862 = vrot.lane.b32.xlu0 %v3056_v6, %s3081_s27 }
0x1e34   :  { %v1863_v8 = vpop.permute.xlu0 %1862 }
0x1e35   :  { %v1865_v9 = vmul.f32 %v1863_v8, %v1848_v61 }
0x1e37   :  { %1867 = vrot.lane.b32.xlu1 %v1865_v9, %s3082_s28 }
0x1ea9   :  { %v1868_v12 = vpop.permute.xlu1 %1867 }
0x1eaa   :  { %2447 = vst.msk [vmem:[%s3554_s5 + $0x10] sm:$0xff] %vm24_vm0, %v1868_v12  ;;  %2796 = vmatmul.mubr.msk.f32.vlgmr.msra.gmra.mrb[14].mxu1 %vm24_vm0, %v1868_v12 }
0x1eab   :  { %2964 = vmatpush3.bf16.msra.mxu1 %v3373_v3  ;;  %2806 = vmatprep.mubr.msk.f32.mxu1 %vm3078_vm1, %v3079_v4 }
0x1eac   :  { %2965 = vmatprep.subr.bf16.mxu1 %v3077_v0 }
0x1eaf   :  { %2967 = vmatpush3.bf16.msra.mxu1 %v3384_v10 }
0x1eb0   :  { %2968 = vmatprep.subr.bf16.mxu1 %v3077_v0 }
0x1f7d   :  { %v1945_v16 = vpop.f32.mrb[14].mxu1 }
0x1f7e   :  { %v1949_v17 = vadd.f32 %v1945_v16, %v786_v15  ;;  %v2797_v18 = vpop.f32.mrb[15].mxu1 }
0x1f80   :  { %v1950_v19 = vmul.f32 %v1949_v17, %v3160_v14 }
0x1f82   :  { %3057 = vtanh.f32 %v1950_v19 }
0x1f8c   :  { %v3058_v20 = vpop.eup %3057 }
0x1f8d   :  { %v1952_v21 = vadd.f32 1.0, %v3058_v20 }
0x1f8f   :  { %v1953_v23 = vmul.f32 0.5, %v1952_v21 }
0x1f91   :  { %v1954_v24 = vsel %vm3151_vm4, %v3058_v20, %v1953_v23 }
0x1f92   :  { %1957 = vrot.lane.b32.xlu0 %v1954_v24, %s3081_s27  ;;  %v1955_v5 = vmul.f32 %v1954_v24, %v1859_v2 }
0x2004   :  { %v1958_v25 = vpop.permute.xlu0 %1957 }
0x2005   :  { %v1960_v26 = vmul.f32 %v1958_v25, %v1954_v24 }
0x2007   :  { %1962 = vrot.lane.b32.xlu1 %v1960_v26, %s3082_s28 }
0x2079   :  { %v1963_v45 = vpop.permute.xlu1 %1962 }
0x207a   :  { %v1965_v40 = vadd.f32 %v1963_v45, %v1955_v5 }
0x207c   :  { %3059 = vtanh.f32 %v1965_v40 }
0x2086   :  { %v3060_v27 = vpop.eup %3059 }
0x2087   :  { %1968 = vrot.lane.b32.xlu0 %v3060_v27, %s3081_s27 }
0x20f9   :  { %v1969_v28 = vpop.permute.xlu0 %1968 }
0x20fa   :  { %v1971_v29 = vmul.f32 %v1969_v28, %v1954_v24 }
0x20fc   :  { %1973 = vrot.lane.b32.xlu1 %v1971_v29, %s3082_s28 }
0x216e   :  { %v1974_v30 = vpop.permute.xlu1 %1973 }
0x216f   :  { %2449 = vst.msk [vmem:[%s3554_s5 + $0x18] sm:$0xff] %vm24_vm0, %v1974_v30  ;;  %2807 = vmatmul.mubr.msk.f32.vlgmr.msra.gmra.mrb[0].mxu1 %vm24_vm0, %v1974_v30 }
0x2170   :  { %2970 = vmatpush3.bf16.msra.mxu1 %v3373_v3  ;;  %2817 = vmatprep.mubr.msk.f32.mxu1 %vm3078_vm1, %v3079_v4 }
0x2171   :  { %2971 = vmatprep.subr.bf16.mxu1 %v3077_v0 }
0x2174   :  { %2973 = vmatpush3.bf16.msra.mxu1 %v3384_v10 }
0x2175   :  { %2974 = vmatprep.subr.bf16.mxu1 %v3077_v0 }
0x2242   :  { %v2051_v31 = vpop.f32.mrb[0].mxu1 }
0x2243   :  { %v2994_v32 = vadd.f32 %v3401_v13, %v2051_v31  ;;  %v2808_v34 = vpop.f32.mrb[1].mxu1 }
0x2245   :  { %v2056_v36 = vmul.f32 %v2994_v32, %v3160_v14 }
0x2247   :  { %3061 = vtanh.f32 %v2056_v36 }
0x2251   :  { %v3062_v7 = vpop.eup %3061 }
0x2252   :  { %v2058_v37 = vadd.f32 1.0, %v3062_v7 }
0x2254   :  { %v2059_v38 = vmul.f32 0.5, %v2058_v37 }
0x2256   :  { %v2060_v39 = vsel %vm3151_vm4, %v3062_v7, %v2059_v38 }
0x2257   :  { %2063 = vrot.lane.b32.xlu0 %v2060_v39, %s3081_s27  ;;  %v2061_v43 = vmul.f32 %v2060_v39, %v1965_v40 }
0x22c9   :  { %v2064_v41 = vpop.permute.xlu0 %2063 }
0x22ca   :  { %v2066_v42 = vmul.f32 %v2064_v41, %v2060_v39 }
0x22cc   :  { %2068 = vrot.lane.b32.xlu1 %v2066_v42, %s3082_s28 }
0x233e   :  { %v2069_v44 = vpop.permute.xlu1 %2068 }
0x233f   :  { %v2071_v46 = vadd.f32 %v2069_v44, %v2061_v43 }
0x2341   :  { %3063 = vtanh.f32 %v2071_v46 }
0x234b   :  { %v3064_v13 = vpop.eup %3063 }
0x234c   :  { %2074 = vrot.lane.b32.xlu0 %v3064_v13, %s3081_s27 }
0x23be   :  { %v2075_v47 = vpop.permute.xlu0 %2074 }
0x23bf   :  { %v2077_v60 = vmul.f32 %v2075_v47, %v2060_v39 }
0x23c1   :  { %2079 = vrot.lane.b32.xlu1 %v2077_v60, %s3082_s28 }
0x2433   :  { %v2080_v48 = vpop.permute.xlu1 %2079 }
0x2434   :  { %2451 = vst.msk [vmem:[%s3554_s5 + $0x20] sm:$0xff] %vm24_vm0, %v2080_v48  ;;  %2818 = vmatmul.mubr.msk.f32.vlgmr.msra.gmra.mrb[2].mxu1 %vm24_vm0, %v2080_v48 }
0x2435   :  { %2976 = vmatpush3.bf16.msra.mxu1 %v3373_v3  ;;  %2828 = vmatprep.mubr.msk.f32.mxu1 %vm3078_vm1, %v3079_v4 }
0x2436   :  { %2977 = vmatprep.subr.bf16.mxu1 %v3077_v0 }
0x2439   :  { %2979 = vmatpush3.bf16.msra.mxu1 %v3384_v10 }
0x243a   :  { %2980 = vmatprep.subr.bf16.mxu1 %v3077_v0 }
0x2507   :  { %v2157_v50 = vpop.f32.mrb[2].mxu1 }
0x2508   :  { %v2995_v51 = vadd.f32 %v2433_v49, %v2157_v50  ;;  %v2819_v33 = vpop.f32.mrb[3].mxu1 }
0x250a   :  { %v2162_v52 = vmul.f32 %v2995_v51, %v3160_v14 }
0x250c   :  { %3065 = vtanh.f32 %v2162_v52 }
0x2516   :  { %v3066_v53 = vpop.eup %3065 }
0x2517   :  { %v2164_v54 = vadd.f32 1.0, %v3066_v53 }
0x2519   :  { %v2165_v35 = vmul.f32 0.5, %v2164_v54 }
0x251b   :  { %v2166_v55 = vsel %vm3151_vm4, %v3066_v53, %v2165_v35 }
0x251c   :  { %2169 = vrot.lane.b32.xlu0 %v2166_v55, %s3081_s27  ;;  %v2167_v59 = vmul.f32 %v2166_v55, %v2071_v46 }
0x258e   :  { %v2170_v56 = vpop.permute.xlu0 %2169 }
0x258f   :  { %v2172_v57 = vmul.f32 %v2170_v56, %v2166_v55 }
0x2591   :  { %2174 = vrot.lane.b32.xlu1 %v2172_v57, %s3082_s28 }
0x2603   :  { %v2175_v61 = vpop.permute.xlu1 %2174 }
0x2604   :  { %v2177_v62 = vadd.f32 %v2175_v61, %v2167_v59 }
0x2606   :  { %3067 = vtanh.f32 %v2177_v62 }
0x2610   :  { %v3068_v63 = vpop.eup %3067 }
0x2611   :  { %2180 = vrot.lane.b32.xlu0 %v3068_v63, %s3081_s27 }
0x2683   :  { %v2181_v1 = vpop.permute.xlu0 %2180 }
0x2684   :  { %v2183_v22 = vmul.f32 %v2181_v1, %v2166_v55 }
0x2686   :  { %2185 = vrot.lane.b32.xlu1 %v2183_v22, %s3082_s28 }
0x26f8   :  { %v2186_v2 = vpop.permute.xlu1 %2185 }
0x26f9   :  { %2453 = vst.msk [vmem:[%s3554_s5 + $0x28] sm:$0xff] %vm24_vm0, %v2186_v2  ;;  %2829 = vmatmul.mubr.msk.f32.vlgmr.msra.gmra.mrb[4].mxu1 %vm24_vm0, %v2186_v2 }
0x26fa   :  { %2982 = vmatpush3.bf16.msra.mxu1 %v3373_v3  ;;  %2839 = vmatprep.mubr.msk.f32.mxu1 %vm3078_vm1, %v3079_v4 }
0x26fb   :  { %2983 = vmatprep.subr.bf16.mxu1 %v3077_v0 }
0x26fe   :  { %2985 = vmatpush3.bf16.msra.mxu1 %v3384_v10 }
0x27cc   :  { %v2263_v6 = vpop.f32.mrb[4].mxu1 }
0x27cd   :  { %v2996_v8 = vadd.f32 %v2433_v49, %v2263_v6  ;;  %v2830_v9 = vpop.f32.mrb[5].mxu1 }
0x27cf   :  { %v2268_v12 = vmul.f32 %v2996_v8, %v3160_v14 }
0x27d1   :  { %3069 = vtanh.f32 %v2268_v12 }
0x27db   :  { %v3070_v15 = vpop.eup %3069 }
0x27dc   :  { %v2270_v16 = vadd.f32 1.0, %v3070_v15 }
0x27de   :  { %v2271_v17 = vmul.f32 0.5, %v2270_v16 }
0x27e0   :  { %v2272_v18 = vsel %vm3151_vm4, %v3070_v15, %v2271_v17 }
0x27e1   :  { %2275 = vrot.lane.b32.xlu0 %v2272_v18, %s3081_s27  ;;  %v2273_v0 = vmul.f32 %v2272_v18, %v2177_v62 }
0x2853   :  { %v2276_v3 = vpop.permute.xlu0 %2275 }
0x2854   :  { %v2278_v4 = vmul.f32 %v2276_v3, %v2272_v18 }
0x2856   :  { %2280 = vrot.lane.b32.xlu1 %v2278_v4, %s3082_s28 }
0x28c8   :  { %v2281_v10 = vpop.permute.xlu1 %2280 }
0x28c9   :  { %v2283_v19 = vadd.f32 %v2281_v10, %v2273_v0 }
0x28cb   :  { %3071 = vtanh.f32 %v2283_v19 }
0x28d5   :  { %v3072_v20 = vpop.eup %3071 }
0x28d6   :  { %2286 = vrot.lane.b32.xlu0 %v3072_v20, %s3081_s27 }
0x2948   :  { %v2287_v21 = vpop.permute.xlu0 %2286 }
0x2949   :  { %v2289_v23 = vmul.f32 %v2287_v21, %v2272_v18 }
0x294b   :  { %2291 = vrot.lane.b32.xlu1 %v2289_v23, %s3082_s28 }
0x29bd   :  { %v2292_v24 = vpop.permute.xlu1 %2291 }
0x29be   :  { %2455 = vst.msk [vmem:[%s3554_s5 + $0x30] sm:$0xff] %vm24_vm0, %v2292_v24  ;;  %2840 = vmatmul.mubr.msk.f32.vlgmr.msra.gmra.mrb[6].mxu1 %vm24_vm0, %v2292_v24 }
0x2a91   :  { %v2369_v25 = vpop.f32.mrb[6].mxu1 }
0x2a92   :  { %v2997_v26 = vadd.f32 %v2433_v49, %v2369_v25  ;;  %v2841_v5 = vpop.f32.mrb[7].mxu1 }
0x2a94   :  { %v2374_v45 = vmul.f32 %v2997_v26, %v3160_v14 }
0x2a96   :  { %3073 = vtanh.f32 %v2374_v45 }
0x2aa0   :  { %v3074_v40 = vpop.eup %3073 }
0x2aa1   :  { %v2376_v27 = vadd.f32 1.0, %v3074_v40 }
0x2aa3   :  { %v2377_v28 = vmul.f32 0.5, %v2376_v27 }
0x2aa5   :  { %v2378_v29 = vsel %vm3151_vm4, %v3074_v40, %v2377_v28 }
0x2aa6   :  { %2381 = vrot.lane.b32.xlu0 %v2378_v29, %s3081_s27  ;;  %v2379_v32 = vmul.f32 %v2378_v29, %v2283_v19 }
0x2b18   :  { %v2382_v30 = vpop.permute.xlu0 %2381 }
0x2b19   :  { %v2384_v31 = vmul.f32 %v2382_v30, %v2378_v29 }
0x2b1b   :  { %2386 = vrot.lane.b32.xlu1 %v2384_v31, %s3082_s28 }
0x2b1f   :  { %1542 = vrot.lane.b32.xlu1 %v3361_v58, %s3083_s23 }
0x2b8d   :  { %v2387_v34 = vpop.permute.xlu1 %2386 }
0x2b8e   :  { %v2389_v36 = vadd.f32 %v2387_v34, %v2379_v32 }
0x2b90   :  { %3075 = vtanh.f32 %v2389_v36  ;;  %2404 = vrot.lane.b32.xlu1 %v2389_v36, %s3083_s23 }
0x2b91   :  { %v1543_v14 = vpop.permute.xlu1 %1542 }
0x2b92   :  { %1545 = vst.msk [vmem:[#allocation3] sm:$0xff] %vm24_vm0, %v1543_v14 }
0x2b9a   :  { %v3076_v7 = vpop.eup %3075 }
0x2b9b   :  { %2392 = vrot.lane.b32.xlu0 %v3076_v7, %s3081_s27 }
0x2c02   :  { %v2405_v11 = vpop.permute.xlu1 %2404 }
0x2c03   :  { %2407 = vst.msk [vmem:[#allocation3 + $0x8] sm:$0xff] %vm24_vm0, %v2405_v11 }
0x2c0d   :  { %v2393_v37 = vpop.permute.xlu0 %2392 }
0x2c0e   :  { %v2395_v38 = vmul.f32 %v2393_v37, %v2378_v29 }
0x2c10   :  { %2397 = vrot.lane.b32.xlu0 %v2395_v38, %s3082_s28 }
0x2c82   :  { %v2398_v39 = vpop.permute.xlu0 %2397 }
0x2c83   :  { %2457 = vst.msk [vmem:[%s3554_s5 + $0x38] sm:$0xff] %vm24_vm0, %v2398_v39  ;;  %2402 = vst.msk [vmem:[#allocation2 + $0x8] sm:$0xff] %vm24_vm0, %v2398_v39 }

</bundles_post_ra>
